<compile_context>
chip_gen: v6e
topology: v6e:2x2x1
jax: 0.10.0
libtpu: 0.0.40
codegen_flags: <defaults>
</compile_context>

<pallas_src>
import math
import jax
import jax.numpy as jnp
from jax.experimental import pallas as pl
from jax.experimental.pallas import tpu as pltpu


# ----------------------------------------------------------------------------
# Pallas kernel: one grid step == one decode time step t.
# h/c state is carried across grid steps in VMEM scratch.
# ----------------------------------------------------------------------------
def make_decoder_kernel(num_layers, B, P, E, A, H):
    n_lstm = 4 + 3 * (num_layers - 1)

    def kernel(enc_ref, att1_ref, emb_ref,
               W_init, b_init, W_hproj, b_hproj, w_fa, b_fa,
               *rest):
        lstm_refs = rest[:n_lstm]
        hout_ref = rest[n_lstm]          # (1, B, H) block of (T, B, H)
        alpha_ref = rest[n_lstm + 1]     # (1, B, P) block of (T, B, P)
        h_sc = rest[n_lstm + 2]          # (num_layers, B, H) scratch
        c_sc = rest[n_lstm + 3]          # (num_layers, B, H) scratch

        t = pl.program_id(0)

        # ---- init_hidden_state (t == 0 only), fused h/c init matmul ----------
        @pl.when(t == 0)
        def _():
            mean_enc = jnp.mean(enc_ref[...], axis=1)                      # (B, E)
            hc0 = jnp.dot(mean_enc, W_init[...],
                          preferred_element_type=jnp.float32) + b_init[...]  # (B, 2H)
            h0 = hc0[:, :H]
            c0 = hc0[:, H:]
            for l in range(num_layers):
                h_sc[l] = h0
                c_sc[l] = c0

        enc = enc_ref[...]                                                 # (B, P, E)
        h_top = h_sc[num_layers - 1]                                       # (B, H)

        # ---- fused decoder-side projections: [att2 | gate_logits] -----------
        hp = jnp.dot(h_top, W_hproj[...],
                     preferred_element_type=jnp.float32) + b_hproj[...]    # (B, A+E)
        att2 = hp[:, :A]                                                   # (B, A)
        gate = jax.nn.sigmoid(hp[:, A:])                                   # (B, E)

        # ---- Attention (att1 precomputed in wrapper) -------------------------
        att = jnp.maximum(att1_ref[...] + att2[:, None, :], 0.0)           # relu, (B,P,A)
        e = jnp.sum(att * w_fa[...].reshape(1, 1, A), axis=-1) + b_fa[...] # (B, P)
        e_max = jnp.max(e, axis=1, keepdims=True)
        p_exp = jnp.exp(e - e_max)
        alpha = p_exp / jnp.sum(p_exp, axis=1, keepdims=True)              # softmax(dim=1)
        awe = jnp.sum(enc * alpha[:, :, None], axis=1)                     # (B, E)
        awe = gate * awe

        # ---- LSTM stack (no concat: two dots into one accumulator) ----------
        emb = emb_ref[0]                                                   # (B, emb)
        idx = 0
        x = emb
        for l in range(num_layers):
            if l == 0:
                Wx, Wa, Wh, b = lstm_refs[0:4]
                idx = 4
                gates = (jnp.dot(emb, Wx[...], preferred_element_type=jnp.float32)
                         + jnp.dot(awe, Wa[...], preferred_element_type=jnp.float32)
                         + jnp.dot(h_sc[l], Wh[...], preferred_element_type=jnp.float32)
                         + b[...])
            else:
                Wx, Wh, b = lstm_refs[idx:idx + 3]
                idx += 3
                gates = (jnp.dot(x, Wx[...], preferred_element_type=jnp.float32)
                         + jnp.dot(h_sc[l], Wh[...], preferred_element_type=jnp.float32)
                         + b[...])
            i_g = jax.nn.sigmoid(gates[:, 0 * H:1 * H])
            f_g = jax.nn.sigmoid(gates[:, 1 * H:2 * H])
            g_g = jnp.tanh(gates[:, 2 * H:3 * H])
            o_g = jax.nn.sigmoid(gates[:, 3 * H:4 * H])
            c_new = f_g * c_sc[l] + i_g * g_g
            h_new = o_g * jnp.tanh(c_new)
            h_sc[l] = h_new
            c_sc[l] = c_new
            x = h_new   # dropout == identity (eval mode)

        # ---- emit top hidden state + alpha (vocab proj + masking in wrapper) -
        hout_ref[0] = x
        alpha_ref[0] = alpha

    return kernel


# ----------------------------------------------------------------------------
# Wrapper: sorting, embedding gather, hoisted encoder projection, batched vocab
# projection and masking in plain JAX; recurrent hot loop in the Pallas kernel.
# ----------------------------------------------------------------------------
def decoder_with_attention_forward(params, encoder_out, encoded_captions,
                                   caption_lengths, num_layers):
    B = encoder_out.shape[0]
    E = encoder_out.shape[-1]
    enc = encoder_out.reshape(B, -1, E).astype(jnp.float32)
    P = enc.shape[1]

    lengths = caption_lengths.reshape(B)
    sort_ind = jnp.argsort(-lengths)                     # descending (stable)
    lengths_sorted = lengths[sort_ind]
    enc = enc[sort_ind]
    caps = encoded_captions[sort_ind]

    embeddings = params["embedding"][caps]               # (B, Lcap, embed)
    decode_lengths = lengths_sorted - 1

    emb_dim = embeddings.shape[-1]
    H = emb_dim
    A = params["W_enc_att"].shape[1]
    V = params["W_fc"].shape[1]

    # Static decode-step count for the pallas_call (no recompile per batch).
    T_static = encoded_captions.shape[1] - 1

    # Pad batch up to a multiple of 8 (f32 sublane granularity).
    B_pad = ((B + 7) // 8) * 8
    pad = B_pad - B
    enc_p = jnp.pad(enc, ((0, pad), (0, 0), (0, 0)))
    emb_t = jnp.transpose(embeddings[:, :T_static, :], (1, 0, 2)).astype(jnp.float32)
    emb_t = jnp.pad(emb_t, ((0, 0), (0, pad), (0, 0)))   # (T, B_pad, emb)

    # Hoisted (t-invariant) encoder attention projection: (B_pad, P, A).
    att1_pre = (jnp.einsum("bpe,ea->bpa", enc_p, params["W_enc_att"])
                + params["b_enc_att"]).astype(jnp.float32)

    # Fused weights / biases.
    W_init = jnp.concatenate([params["W_init_h"], params["W_init_c"]], axis=1)   # (E, 2H)
    b_init = jnp.concatenate([params["b_init_h"], params["b_init_c"]]).reshape(1, -1)
    W_hproj = jnp.concatenate([params["W_dec_att"], params["W_fbeta"]], axis=1)  # (H, A+E)
    b_hproj = jnp.concatenate([params["b_dec_att"], params["b_fbeta"]]).reshape(1, -1)

    inputs = [
        enc_p, att1_pre, emb_t,
        W_init, b_init,
        W_hproj, b_hproj,
        params["w_full_att"].reshape(1, -1), params["b_full_att"].reshape(1, 1),
    ]
    for l in range(num_layers):
        b_l = (params["b_ih"][l] + params["b_hh"][l]).reshape(1, -1)
        if l == 0:
            W_ih0 = params["W_ih"][0]
            inputs += [W_ih0[:emb_dim], W_ih0[emb_dim:], params["W_hh"][0], b_l]
        else:
            inputs += [params["W_ih"][l], params["W_hh"][l], b_l]

    def full_spec(shape):
        nd = len(shape)
        return pl.BlockSpec(shape, lambda t, nd=nd: (0,) * nd)

    in_specs = [full_spec(enc_p.shape),
                full_spec(att1_pre.shape),
                pl.BlockSpec((1, B_pad, emb_dim), lambda t: (t, 0, 0))]
    in_specs += [full_spec(x.shape) for x in inputs[3:]]

    out_shape = (jax.ShapeDtypeStruct((T_static, B_pad, H), jnp.float32),
                 jax.ShapeDtypeStruct((T_static, B_pad, P), jnp.float32))
    out_specs = [pl.BlockSpec((1, B_pad, H), lambda t: (t, 0, 0)),
                 pl.BlockSpec((1, B_pad, P), lambda t: (t, 0, 0))]

    kernel = make_decoder_kernel(num_layers, B_pad, P, E, A, H)

    h_tb, alpha_tb = pl.pallas_call(
        kernel,
        out_shape=out_shape,
        grid_spec=pltpu.PrefetchScalarGridSpec(
            num_scalar_prefetch=0,
            grid=(T_static,),
            in_specs=in_specs,
            out_specs=out_specs,
            scratch_shapes=[pltpu.VMEM((num_layers, B_pad, H), jnp.float32),
                            pltpu.VMEM((num_layers, B_pad, H), jnp.float32)]),
        compiler_params=pltpu.CompilerParams(
            dimension_semantics=("arbitrary",),      # recurrence: sequential over t
            vmem_limit_bytes=64 * 1024 * 1024),
    )(*inputs)

    # Dynamic T only used to shape the returned tensors (PyTorch convention);
    # it does not affect the compiled pallas_call.
    T_dyn = int(jax.device_get(jnp.max(decode_lengths)))

    h_bt = jnp.transpose(h_tb[:T_dyn, :B], (1, 0, 2))         # (B, T, H)
    alphas = jnp.transpose(alpha_tb[:T_dyn, :B], (1, 0, 2))   # (B, T, P)

    # Batched vocab projection (one big matmul over all time steps) + masking.
    preds = jnp.einsum("bth,hv->btv", h_bt, params["W_fc"]) + params["b_fc"]
    valid = (decode_lengths[:, None] > jnp.arange(T_dyn))[:, :, None]
    predictions = jnp.where(valid, preds, 0.0)
    alphas = jnp.where(valid, alphas, 0.0)
    return predictions, caps, decode_lengths, alphas, sort_ind


# ----------------------------------------------------------------------------
# Deterministic parameter init (shapes follow the PyTorch module __init__).
# ----------------------------------------------------------------------------
def init_params(key, *, vocab_size, embed_dim, decoder_dim, encoder_dim,
                attention_dim, num_layers):
    assert decoder_dim == embed_dim, "module requires decoder_dim == embed_dim"
    keys = iter(jax.random.split(key, 64))

    def u(shape, scale):
        return jax.random.uniform(next(keys), shape, jnp.float32, -scale, scale)

    ke = 1.0 / math.sqrt(encoder_dim)
    kd = 1.0 / math.sqrt(decoder_dim)
    ka = 1.0 / math.sqrt(attention_dim)

    p = {}
    p["embedding"] = u((vocab_size, embed_dim), 0.1)
    p["W_init_h"] = u((encoder_dim, decoder_dim), ke)
    p["b_init_h"] = u((decoder_dim,), ke)
    p["W_init_c"] = u((encoder_dim, decoder_dim), ke)
    p["b_init_c"] = u((decoder_dim,), ke)
    p["W_enc_att"] = u((encoder_dim, attention_dim), ke)
    p["b_enc_att"] = u((attention_dim,), ke)
    p["W_dec_att"] = u((decoder_dim, attention_dim), kd)
    p["b_dec_att"] = u((attention_dim,), kd)
    p["w_full_att"] = u((attention_dim,), ka)
    p["b_full_att"] = u((1,), ka)
    p["W_fbeta"] = u((decoder_dim, encoder_dim), kd)
    p["b_fbeta"] = u((encoder_dim,), kd)
    p["W_fc"] = u((decoder_dim, vocab_size), 0.1)
    p["b_fc"] = jnp.zeros((vocab_size,), jnp.float32)

    H = embed_dim
    p["W_ih"], p["b_ih"], p["W_hh"], p["b_hh"] = [], [], [], []
    for l in range(num_layers):
        in_sz = embed_dim + encoder_dim if l == 0 else embed_dim
        p["W_ih"].append(u((in_sz, 4 * H), 0.1))
        p["b_ih"].append(u((4 * H,), 0.1))
        p["W_hh"].append(u((H, 4 * H), 0.1))
        p["b_hh"].append(u((4 * H,), 0.1))
    return p


# ----------------------------------------------------------------------------
# Pure-JAX reference (same math, no Pallas) for verification.
# ----------------------------------------------------------------------------
def reference_forward(p, encoder_out, encoded_captions, caption_lengths, num_layers):
    B = encoder_out.shape[0]
    E = encoder_out.shape[-1]
    enc = encoder_out.reshape(B, -1, E).astype(jnp.float32)
    lengths = caption_lengths.reshape(B)
    sort_ind = jnp.argsort(-lengths)
    lengths_sorted = lengths[sort_ind]
    enc = enc[sort_ind]
    caps = encoded_captions[sort_ind]
    emb = p["embedding"][caps]
    decode_lengths = lengths_sorted - 1
    T = int(jax.device_get(jnp.max(decode_lengths)))
    H = emb.shape[-1]

    mean_enc = enc.mean(axis=1)
    h = [mean_enc @ p["W_init_h"] + p["b_init_h"] for _ in range(num_layers)]
    c = [mean_enc @ p["W_init_c"] + p["b_init_c"] for _ in range(num_layers)]

    preds_all, alphas_all = [], []
    for t in range(T):
        att1 = enc @ p["W_enc_att"] + p["b_enc_att"]
        att2 = h[-1] @ p["W_dec_att"] + p["b_dec_att"]
        att = jax.nn.relu(att1 + att2[:, None, :])
        e = (att * p["w_full_att"][None, None, :]).sum(-1) + p["b_full_att"]
        alpha = jax.nn.softmax(e, axis=1)
        awe = (enc * alpha[:, :, None]).sum(1)
        gate = jax.nn.sigmoid(h[-1] @ p["W_fbeta"] + p["b_fbeta"])
        awe = gate * awe
        x = jnp.concatenate([emb[:, t, :], awe], axis=1)
        for l in range(num_layers):
            gates = x @ p["W_ih"][l] + p["b_ih"][l] + h[l] @ p["W_hh"][l] + p["b_hh"][l]
            i_g = jax.nn.sigmoid(gates[:, :H])
            f_g = jax.nn.sigmoid(gates[:, H:2 * H])
            g_g = jnp.tanh(gates[:, 2 * H:3 * H])
            o_g = jax.nn.sigmoid(gates[:, 3 * H:])
            c[l] = f_g * c[l] + i_g * g_g
            h[l] = o_g * jnp.tanh(c[l])
            x = h[l]
        preds = x @ p["W_fc"] + p["b_fc"]
        valid = (decode_lengths > t)[:, None]
        preds_all.append(jnp.where(valid, preds, 0.0))
        alphas_all.append(jnp.where(valid, alpha, 0.0))
    return jnp.stack(preds_all, 1), jnp.stack(alphas_all, 1)


if __name__ == "__main__":
    key = jax.random.PRNGKey(0)
    B, HS, WS = 2, 4, 4
    encoder_dim, attention_dim = 32, 32
    embed_dim = decoder_dim = 32
    vocab_size, num_layers, max_cap = 64, 2, 8

    kp, ke, kc = jax.random.split(key, 3)
    params = init_params(kp, vocab_size=vocab_size, embed_dim=embed_dim,
                         decoder_dim=decoder_dim, encoder_dim=encoder_dim,
                         attention_dim=attention_dim, num_layers=num_layers)

    encoder_out = jax.random.normal(ke, (B, HS, WS, encoder_dim), jnp.float32)
    encoded_captions = jax.random.randint(kc, (B, max_cap), 0, vocab_size, jnp.int32)
    # max decode length (6) < static step count (7) to exercise the mask+slice path
    caption_lengths = jnp.array([[6], [7]], dtype=jnp.int32)

    preds, caps, dec_lens, alphas, sort_ind = decoder_with_attention_forward(
        params, encoder_out, encoded_captions, caption_lengths, num_layers)
    jax.block_until_ready((preds, alphas))

    ref_preds, ref_alphas = reference_forward(
        params, encoder_out, encoded_captions, caption_lengths, num_layers)

    assert preds.shape == ref_preds.shape and alphas.shape == ref_alphas.shape
    assert jnp.allclose(preds, ref_preds, atol=5e-3, rtol=5e-3), (
        float(jnp.max(jnp.abs(preds - ref_preds))))
    assert jnp.allclose(alphas, ref_alphas, atol=5e-3, rtol=5e-3), (
        float(jnp.max(jnp.abs(alphas - ref_alphas))))
    print("KERNEL_OK")
</pallas_src>

<mosaic_0001>
module attributes {stable_mosaic.version = 11 : i64} {
  func.func @kernel(%arg0: i32, %arg1: memref<8x16x32xf32, #tpu.memory_space<vmem>>, %arg2: memref<8x16x32xf32, #tpu.memory_space<vmem>>, %arg3: memref<1x8x32xf32, #tpu.memory_space<vmem>>, %arg4: memref<32x64xf32, #tpu.memory_space<vmem>>, %arg5: memref<1x64xf32, #tpu.memory_space<vmem>>, %arg6: memref<32x64xf32, #tpu.memory_space<vmem>>, %arg7: memref<1x64xf32, #tpu.memory_space<vmem>>, %arg8: memref<1x32xf32, #tpu.memory_space<vmem>>, %arg9: memref<1x1xf32, #tpu.memory_space<vmem>>, %arg10: memref<32x128xf32, #tpu.memory_space<vmem>>, %arg11: memref<32x128xf32, #tpu.memory_space<vmem>>, %arg12: memref<32x128xf32, #tpu.memory_space<vmem>>, %arg13: memref<1x128xf32, #tpu.memory_space<vmem>>, %arg14: memref<32x128xf32, #tpu.memory_space<vmem>>, %arg15: memref<32x128xf32, #tpu.memory_space<vmem>>, %arg16: memref<1x128xf32, #tpu.memory_space<vmem>>, %arg17: memref<1x8x32xf32, #tpu.memory_space<vmem>>, %arg18: memref<1x8x16xf32, #tpu.memory_space<vmem>>, %arg19: memref<2x8x32xf32, #tpu.memory_space<vmem>>, %arg20: memref<2x8x32xf32, #tpu.memory_space<vmem>>) attributes {dimension_semantics = [#tpu.dimension_semantics<arbitrary>], iteration_bounds = array<i64: 7>, scalar_prefetch = 0 : i64, scratch_operands = 2 : i64, tpu.core_type = #tpu.core_type<tc>, window_params = [{pipeline_mode = #tpu.pipeline_mode<synchronous>, transform_indices = @transform_0, window_bounds = array<i64: 8, 16, 32>}, {pipeline_mode = #tpu.pipeline_mode<synchronous>, transform_indices = @transform_1, window_bounds = array<i64: 8, 16, 32>}, {transform_indices = @transform_2, window_bounds = array<i64: 1, 8, 32>}, {pipeline_mode = #tpu.pipeline_mode<synchronous>, transform_indices = @transform_3, window_bounds = array<i64: 32, 64>}, {pipeline_mode = #tpu.pipeline_mode<synchronous>, transform_indices = @transform_4, window_bounds = array<i64: 1, 64>}, {pipeline_mode = #tpu.pipeline_mode<synchronous>, transform_indices = @transform_5, window_bounds = array<i64: 32, 64>}, {pipeline_mode = #tpu.pipeline_mode<synchronous>, transform_indices = @transform_6, window_bounds = array<i64: 1, 64>}, {pipeline_mode = #tpu.pipeline_mode<synchronous>, transform_indices = @transform_7, window_bounds = array<i64: 1, 32>}, {pipeline_mode = #tpu.pipeline_mode<synchronous>, transform_indices = @transform_8, window_bounds = array<i64: 1, 1>}, {pipeline_mode = #tpu.pipeline_mode<synchronous>, transform_indices = @transform_9, window_bounds = array<i64: 32, 128>}, {pipeline_mode = #tpu.pipeline_mode<synchronous>, transform_indices = @transform_10, window_bounds = array<i64: 32, 128>}, {pipeline_mode = #tpu.pipeline_mode<synchronous>, transform_indices = @transform_11, window_bounds = array<i64: 32, 128>}, {pipeline_mode = #tpu.pipeline_mode<synchronous>, transform_indices = @transform_12, window_bounds = array<i64: 1, 128>}, {pipeline_mode = #tpu.pipeline_mode<synchronous>, transform_indices = @transform_13, window_bounds = array<i64: 32, 128>}, {pipeline_mode = #tpu.pipeline_mode<synchronous>, transform_indices = @transform_14, window_bounds = array<i64: 32, 128>}, {pipeline_mode = #tpu.pipeline_mode<synchronous>, transform_indices = @transform_15, window_bounds = array<i64: 1, 128>}, {transform_indices = @transform_16, window_bounds = array<i64: 1, 8, 32>}, {transform_indices = @transform_17, window_bounds = array<i64: 1, 8, 16>}]} {
    %c0_i32 = arith.constant 0 : i32
    %0 = arith.cmpi eq, %arg0, %c0_i32 : i32
    %1 = arith.extui %0 : i1 to i32
    %c0_i32_0 = arith.constant 0 : i32
    %2 = arith.cmpi ne, %1, %c0_i32_0 : i32
    scf.if %2 {
      %c0_80 = arith.constant 0 : index
      %c0_81 = arith.constant 0 : index
      %c0_82 = arith.constant 0 : index
      %143 = vector.load %arg1[%c0_80, %c0_81, %c0_82] : memref<8x16x32xf32, #tpu.memory_space<vmem>>, vector<8x16x32xf32>
      %cst_83 = arith.constant dense<0.000000e+00> : vector<8x32xf32>
      %144 = vector.multi_reduction <add>, %143, %cst_83 [1] : vector<8x16x32xf32> to vector<8x32xf32>
      %cst_84 = arith.constant 1.600000e+01 : f32
      %145 = vector.broadcast %cst_84 : f32 to vector<8x32xf32>
      %146 = arith.divf %144, %145 : vector<8x32xf32>
      %c0_85 = arith.constant 0 : index
      %c0_86 = arith.constant 0 : index
      %147 = vector.load %arg4[%c0_85, %c0_86] : memref<32x64xf32, #tpu.memory_space<vmem>>, vector<32x64xf32>
      %cst_87 = arith.constant dense<0.000000e+00> : vector<8x64xf32>
      %148 = tpu.matmul %146, %147, %cst_87 {dimension_numbers = #tpu.dot_dimension_numbers<[1], [0], [0], [1], [0, 0, 1, 1], [], []>} : vector<8x32xf32>, vector<32x64xf32>, vector<8x64xf32> -> vector<8x64xf32>
      %c0_88 = arith.constant 0 : index
      %c0_89 = arith.constant 0 : index
      %149 = vector.load %arg5[%c0_88, %c0_89] : memref<1x64xf32, #tpu.memory_space<vmem>>, vector<1x64xf32>
      %150 = vector.broadcast %149 : vector<1x64xf32> to vector<8x64xf32>
      %151 = arith.addf %148, %150 : vector<8x64xf32>
      %152 = vector.extract_strided_slice %151 {offsets = [0, 0], sizes = [8, 32], strides = [1, 1]} : vector<8x64xf32> to vector<8x32xf32>
      %153 = vector.extract_strided_slice %151 {offsets = [0, 32], sizes = [8, 32], strides = [1, 1]} : vector<8x64xf32> to vector<8x32xf32>
      %c0_90 = arith.constant 0 : index
      %c0_91 = arith.constant 0 : index
      %c0_92 = arith.constant 0 : index
      %154 = vector.load %arg19[%c0_90, %c0_91, %c0_92] : memref<2x8x32xf32, #tpu.memory_space<vmem>>, vector<1x8x32xf32>
      %155 = vector.shape_cast %154 : vector<1x8x32xf32> to vector<8x32xf32>
      %156 = vector.shape_cast %152 : vector<8x32xf32> to vector<1x8x32xf32>
      tpu.vector_store %arg19[%c0_90, %c0_91, %c0_92], %156 {strides = array<i32>} : memref<2x8x32xf32, #tpu.memory_space<vmem>>, vector<1x8x32xf32>,
      %c0_93 = arith.constant 0 : index
      %c0_94 = arith.constant 0 : index
      %c0_95 = arith.constant 0 : index
      %157 = vector.load %arg20[%c0_93, %c0_94, %c0_95] : memref<2x8x32xf32, #tpu.memory_space<vmem>>, vector<1x8x32xf32>
      %158 = vector.shape_cast %157 : vector<1x8x32xf32> to vector<8x32xf32>
      %159 = vector.shape_cast %153 : vector<8x32xf32> to vector<1x8x32xf32>
      tpu.vector_store %arg20[%c0_93, %c0_94, %c0_95], %159 {strides = array<i32>} : memref<2x8x32xf32, #tpu.memory_space<vmem>>, vector<1x8x32xf32>,
      %c1_96 = arith.constant 1 : index
      %c0_97 = arith.constant 0 : index
      %c0_98 = arith.constant 0 : index
      %160 = vector.load %arg19[%c1_96, %c0_97, %c0_98] : memref<2x8x32xf32, #tpu.memory_space<vmem>>, vector<1x8x32xf32>
      %161 = vector.shape_cast %160 : vector<1x8x32xf32> to vector<8x32xf32>
      %162 = vector.shape_cast %152 : vector<8x32xf32> to vector<1x8x32xf32>
      tpu.vector_store %arg19[%c1_96, %c0_97, %c0_98], %162 {strides = array<i32>} : memref<2x8x32xf32, #tpu.memory_space<vmem>>, vector<1x8x32xf32>,
      %c1_99 = arith.constant 1 : index
      %c0_100 = arith.constant 0 : index
      %c0_101 = arith.constant 0 : index
      %163 = vector.load %arg20[%c1_99, %c0_100, %c0_101] : memref<2x8x32xf32, #tpu.memory_space<vmem>>, vector<1x8x32xf32>
      %164 = vector.shape_cast %163 : vector<1x8x32xf32> to vector<8x32xf32>
      %165 = vector.shape_cast %153 : vector<8x32xf32> to vector<1x8x32xf32>
      tpu.vector_store %arg20[%c1_99, %c0_100, %c0_101], %165 {strides = array<i32>} : memref<2x8x32xf32, #tpu.memory_space<vmem>>, vector<1x8x32xf32>,
    } else {
    }
    %c0 = arith.constant 0 : index
    %c0_1 = arith.constant 0 : index
    %c0_2 = arith.constant 0 : index
    %3 = vector.load %arg1[%c0, %c0_1, %c0_2] : memref<8x16x32xf32, #tpu.memory_space<vmem>>, vector<8x16x32xf32>
    %c1 = arith.constant 1 : index
    %c0_3 = arith.constant 0 : index
    %c0_4 = arith.constant 0 : index
    %4 = vector.load %arg19[%c1, %c0_3, %c0_4] : memref<2x8x32xf32, #tpu.memory_space<vmem>>, vector<1x8x32xf32>
    %5 = vector.shape_cast %4 : vector<1x8x32xf32> to vector<8x32xf32>
    %c0_5 = arith.constant 0 : index
    %c0_6 = arith.constant 0 : index
    %6 = vector.load %arg6[%c0_5, %c0_6] : memref<32x64xf32, #tpu.memory_space<vmem>>, vector<32x64xf32>
    %cst = arith.constant dense<0.000000e+00> : vector<8x64xf32>
    %7 = tpu.matmul %5, %6, %cst {dimension_numbers = #tpu.dot_dimension_numbers<[1], [0], [0], [1], [0, 0, 1, 1], [], []>} : vector<8x32xf32>, vector<32x64xf32>, vector<8x64xf32> -> vector<8x64xf32>
    %c0_7 = arith.constant 0 : index
    %c0_8 = arith.constant 0 : index
    %8 = vector.load %arg7[%c0_7, %c0_8] : memref<1x64xf32, #tpu.memory_space<vmem>>, vector<1x64xf32>
    %9 = vector.broadcast %8 : vector<1x64xf32> to vector<8x64xf32>
    %10 = arith.addf %7, %9 : vector<8x64xf32>
    %11 = vector.extract_strided_slice %10 {offsets = [0, 0], sizes = [8, 32], strides = [1, 1]} : vector<8x64xf32> to vector<8x32xf32>
    %12 = vector.extract_strided_slice %10 {offsets = [0, 32], sizes = [8, 32], strides = [1, 1]} : vector<8x64xf32> to vector<8x32xf32>
    %13 = arith.negf %12 : vector<8x32xf32>
    %14 = math.exp %13 : vector<8x32xf32>
    %cst_9 = arith.constant 1.000000e+00 : f32
    %15 = vector.broadcast %cst_9 : f32 to vector<8x32xf32>
    %16 = arith.addf %15, %14 : vector<8x32xf32>
    %17 = arith.divf %15, %16 : vector<8x32xf32>
    %c0_10 = arith.constant 0 : index
    %c0_11 = arith.constant 0 : index
    %c0_12 = arith.constant 0 : index
    %18 = vector.load %arg2[%c0_10, %c0_11, %c0_12] : memref<8x16x32xf32, #tpu.memory_space<vmem>>, vector<8x16x32xf32>
    %19 = vector.shape_cast %11 : vector<8x32xf32> to vector<8x1x32xf32>
    %20 = vector.broadcast %19 : vector<8x1x32xf32> to vector<8x16x32xf32>
    %21 = arith.addf %18, %20 : vector<8x16x32xf32>
    %cst_13 = arith.constant 0.000000e+00 : f32
    %22 = vector.broadcast %cst_13 : f32 to vector<8x16x32xf32>
    %23 = arith.maximumf %21, %22 : vector<8x16x32xf32>
    %c0_14 = arith.constant 0 : index
    %c0_15 = arith.constant 0 : index
    %24 = vector.load %arg8[%c0_14, %c0_15] : memref<1x32xf32, #tpu.memory_space<vmem>>, vector<1x32xf32>
    %25 = vector.shape_cast %24 : vector<1x32xf32> to vector<1x1x32xf32>
    %26 = vector.broadcast %25 : vector<1x1x32xf32> to vector<8x16x32xf32>
    %27 = arith.mulf %23, %26 : vector<8x16x32xf32>
    %cst_16 = arith.constant dense<0.000000e+00> : vector<8x16xf32>
    %28 = vector.multi_reduction <add>, %27, %cst_16 [2] : vector<8x16x32xf32> to vector<8x16xf32>
    %c0_17 = arith.constant 0 : index
    %c0_18 = arith.constant 0 : index
    %29 = vector.load %arg9[%c0_17, %c0_18] : memref<1x1xf32, #tpu.memory_space<vmem>>, vector<1x1xf32>
    %30 = vector.broadcast %29 : vector<1x1xf32> to vector<8x16xf32>
    %31 = arith.addf %28, %30 : vector<8x16xf32>
    %cst_19 = arith.constant dense<0xFF800000> : vector<8xf32>
    %32 = vector.multi_reduction <maximumf>, %31, %cst_19 [1] : vector<8x16xf32> to vector<8xf32>
    %33 = vector.shape_cast %32 : vector<8xf32> to vector<8x1xf32>
    %34 = vector.broadcast %33 : vector<8x1xf32> to vector<8x16xf32>
    %35 = arith.subf %31, %34 : vector<8x16xf32>
    %36 = math.exp %35 : vector<8x16xf32>
    %cst_20 = arith.constant dense<0.000000e+00> : vector<8xf32>
    %37 = vector.multi_reduction <add>, %36, %cst_20 [1] : vector<8x16xf32> to vector<8xf32>
    %38 = vector.shape_cast %37 : vector<8xf32> to vector<8x1xf32>
    %39 = vector.broadcast %38 : vector<8x1xf32> to vector<8x16xf32>
    %40 = arith.divf %36, %39 : vector<8x16xf32>
    %41 = vector.shape_cast %40 : vector<8x16xf32> to vector<8x16x1xf32>
    %42 = vector.broadcast %41 : vector<8x16x1xf32> to vector<8x16x32xf32>
    %43 = arith.mulf %3, %42 : vector<8x16x32xf32>
    %cst_21 = arith.constant dense<0.000000e+00> : vector<8x32xf32>
    %44 = vector.multi_reduction <add>, %43, %cst_21 [1] : vector<8x16x32xf32> to vector<8x32xf32>
    %45 = arith.mulf %17, %44 : vector<8x32xf32>
    %c0_22 = arith.constant 0 : index
    %c0_23 = arith.constant 0 : index
    %c0_24 = arith.constant 0 : index
    %46 = vector.load %arg3[%c0_22, %c0_23, %c0_24] : memref<1x8x32xf32, #tpu.memory_space<vmem>>, vector<1x8x32xf32>
    %47 = vector.shape_cast %46 : vector<1x8x32xf32> to vector<8x32xf32>
    %c0_25 = arith.constant 0 : index
    %c0_26 = arith.constant 0 : index
    %48 = vector.load %arg10[%c0_25, %c0_26] : memref<32x128xf32, #tpu.memory_space<vmem>>, vector<32x128xf32>
    %cst_27 = arith.constant dense<0.000000e+00> : vector<8x128xf32>
    %49 = tpu.matmul %47, %48, %cst_27 {dimension_numbers = #tpu.dot_dimension_numbers<[1], [0], [0], [1], [0, 0, 1, 1], [], []>} : vector<8x32xf32>, vector<32x128xf32>, vector<8x128xf32> -> vector<8x128xf32>
    %c0_28 = arith.constant 0 : index
    %c0_29 = arith.constant 0 : index
    %50 = vector.load %arg11[%c0_28, %c0_29] : memref<32x128xf32, #tpu.memory_space<vmem>>, vector<32x128xf32>
    %cst_30 = arith.constant dense<0.000000e+00> : vector<8x128xf32>
    %51 = tpu.matmul %45, %50, %cst_30 {dimension_numbers = #tpu.dot_dimension_numbers<[1], [0], [0], [1], [0, 0, 1, 1], [], []>} : vector<8x32xf32>, vector<32x128xf32>, vector<8x128xf32> -> vector<8x128xf32>
    %52 = arith.addf %49, %51 : vector<8x128xf32>
    %c0_31 = arith.constant 0 : index
    %c0_32 = arith.constant 0 : index
    %c0_33 = arith.constant 0 : index
    %53 = vector.load %arg19[%c0_31, %c0_32, %c0_33] : memref<2x8x32xf32, #tpu.memory_space<vmem>>, vector<1x8x32xf32>
    %54 = vector.shape_cast %53 : vector<1x8x32xf32> to vector<8x32xf32>
    %c0_34 = arith.constant 0 : index
    %c0_35 = arith.constant 0 : index
    %55 = vector.load %arg12[%c0_34, %c0_35] : memref<32x128xf32, #tpu.memory_space<vmem>>, vector<32x128xf32>
    %cst_36 = arith.constant dense<0.000000e+00> : vector<8x128xf32>
    %56 = tpu.matmul %54, %55, %cst_36 {dimension_numbers = #tpu.dot_dimension_numbers<[1], [0], [0], [1], [0, 0, 1, 1], [], []>} : vector<8x32xf32>, vector<32x128xf32>, vector<8x128xf32> -> vector<8x128xf32>
    %57 = arith.addf %52, %56 : vector<8x128xf32>
    %c0_37 = arith.constant 0 : index
    %c0_38 = arith.constant 0 : index
    %58 = vector.load %arg13[%c0_37, %c0_38] : memref<1x128xf32, #tpu.memory_space<vmem>>, vector<1x128xf32>
    %59 = vector.broadcast %58 : vector<1x128xf32> to vector<8x128xf32>
    %60 = arith.addf %57, %59 : vector<8x128xf32>
    %61 = vector.extract_strided_slice %60 {offsets = [0, 0], sizes = [8, 32], strides = [1, 1]} : vector<8x128xf32> to vector<8x32xf32>
    %62 = arith.negf %61 : vector<8x32xf32>
    %63 = math.exp %62 : vector<8x32xf32>
    %cst_39 = arith.constant 1.000000e+00 : f32
    %64 = vector.broadcast %cst_39 : f32 to vector<8x32xf32>
    %65 = arith.addf %64, %63 : vector<8x32xf32>
    %66 = arith.divf %64, %65 : vector<8x32xf32>
    %67 = vector.extract_strided_slice %60 {offsets = [0, 32], sizes = [8, 32], strides = [1, 1]} : vector<8x128xf32> to vector<8x32xf32>
    %68 = arith.negf %67 : vector<8x32xf32>
    %69 = math.exp %68 : vector<8x32xf32>
    %cst_40 = arith.constant 1.000000e+00 : f32
    %70 = vector.broadcast %cst_40 : f32 to vector<8x32xf32>
    %71 = arith.addf %70, %69 : vector<8x32xf32>
    %72 = arith.divf %70, %71 : vector<8x32xf32>
    %73 = vector.extract_strided_slice %60 {offsets = [0, 64], sizes = [8, 32], strides = [1, 1]} : vector<8x128xf32> to vector<8x32xf32>
    %74 = math.tanh %73 : vector<8x32xf32>
    %75 = vector.extract_strided_slice %60 {offsets = [0, 96], sizes = [8, 32], strides = [1, 1]} : vector<8x128xf32> to vector<8x32xf32>
    %76 = arith.negf %75 : vector<8x32xf32>
    %77 = math.exp %76 : vector<8x32xf32>
    %cst_41 = arith.constant 1.000000e+00 : f32
    %78 = vector.broadcast %cst_41 : f32 to vector<8x32xf32>
    %79 = arith.addf %78, %77 : vector<8x32xf32>
    %80 = arith.divf %78, %79 : vector<8x32xf32>
    %c0_42 = arith.constant 0 : index
    %c0_43 = arith.constant 0 : index
    %c0_44 = arith.constant 0 : index
    %81 = vector.load %arg20[%c0_42, %c0_43, %c0_44] : memref<2x8x32xf32, #tpu.memory_space<vmem>>, vector<1x8x32xf32>
    %82 = vector.shape_cast %81 : vector<1x8x32xf32> to vector<8x32xf32>
    %83 = arith.mulf %72, %82 : vector<8x32xf32>
    %84 = arith.mulf %66, %74 : vector<8x32xf32>
    %85 = arith.addf %83, %84 : vector<8x32xf32>
    %86 = math.tanh %85 : vector<8x32xf32>
    %87 = arith.mulf %80, %86 : vector<8x32xf32>
    %c0_45 = arith.constant 0 : index
    %c0_46 = arith.constant 0 : index
    %c0_47 = arith.constant 0 : index
    %88 = vector.load %arg19[%c0_45, %c0_46, %c0_47] : memref<2x8x32xf32, #tpu.memory_space<vmem>>, vector<1x8x32xf32>
    %89 = vector.shape_cast %88 : vector<1x8x32xf32> to vector<8x32xf32>
    %90 = vector.shape_cast %87 : vector<8x32xf32> to vector<1x8x32xf32>
    tpu.vector_store %arg19[%c0_45, %c0_46, %c0_47], %90 {strides = array<i32>} : memref<2x8x32xf32, #tpu.memory_space<vmem>>, vector<1x8x32xf32>,
    %c0_48 = arith.constant 0 : index
    %c0_49 = arith.constant 0 : index
    %c0_50 = arith.constant 0 : index
    %91 = vector.load %arg20[%c0_48, %c0_49, %c0_50] : memref<2x8x32xf32, #tpu.memory_space<vmem>>, vector<1x8x32xf32>
    %92 = vector.shape_cast %91 : vector<1x8x32xf32> to vector<8x32xf32>
    %93 = vector.shape_cast %85 : vector<8x32xf32> to vector<1x8x32xf32>
    tpu.vector_store %arg20[%c0_48, %c0_49, %c0_50], %93 {strides = array<i32>} : memref<2x8x32xf32, #tpu.memory_space<vmem>>, vector<1x8x32xf32>,
    %c0_51 = arith.constant 0 : index
    %c0_52 = arith.constant 0 : index
    %94 = vector.load %arg14[%c0_51, %c0_52] : memref<32x128xf32, #tpu.memory_space<vmem>>, vector<32x128xf32>
    %cst_53 = arith.constant dense<0.000000e+00> : vector<8x128xf32>
    %95 = tpu.matmul %87, %94, %cst_53 {dimension_numbers = #tpu.dot_dimension_numbers<[1], [0], [0], [1], [0, 0, 1, 1], [], []>} : vector<8x32xf32>, vector<32x128xf32>, vector<8x128xf32> -> vector<8x128xf32>
    %c1_54 = arith.constant 1 : index
    %c0_55 = arith.constant 0 : index
    %c0_56 = arith.constant 0 : index
    %96 = vector.load %arg19[%c1_54, %c0_55, %c0_56] : memref<2x8x32xf32, #tpu.memory_space<vmem>>, vector<1x8x32xf32>
    %97 = vector.shape_cast %96 : vector<1x8x32xf32> to vector<8x32xf32>
    %c0_57 = arith.constant 0 : index
    %c0_58 = arith.constant 0 : index
    %98 = vector.load %arg15[%c0_57, %c0_58] : memref<32x128xf32, #tpu.memory_space<vmem>>, vector<32x128xf32>
    %cst_59 = arith.constant dense<0.000000e+00> : vector<8x128xf32>
    %99 = tpu.matmul %97, %98, %cst_59 {dimension_numbers = #tpu.dot_dimension_numbers<[1], [0], [0], [1], [0, 0, 1, 1], [], []>} : vector<8x32xf32>, vector<32x128xf32>, vector<8x128xf32> -> vector<8x128xf32>
    %100 = arith.addf %95, %99 : vector<8x128xf32>
    %c0_60 = arith.constant 0 : index
    %c0_61 = arith.constant 0 : index
    %101 = vector.load %arg16[%c0_60, %c0_61] : memref<1x128xf32, #tpu.memory_space<vmem>>, vector<1x128xf32>
    %102 = vector.broadcast %101 : vector<1x128xf32> to vector<8x128xf32>
    %103 = arith.addf %100, %102 : vector<8x128xf32>
    %104 = vector.extract_strided_slice %103 {offsets = [0, 0], sizes = [8, 32], strides = [1, 1]} : vector<8x128xf32> to vector<8x32xf32>
    %105 = arith.negf %104 : vector<8x32xf32>
    %106 = math.exp %105 : vector<8x32xf32>
    %cst_62 = arith.constant 1.000000e+00 : f32
    %107 = vector.broadcast %cst_62 : f32 to vector<8x32xf32>
    %108 = arith.addf %107, %106 : vector<8x32xf32>
    %109 = arith.divf %107, %108 : vector<8x32xf32>
    %110 = vector.extract_strided_slice %103 {offsets = [0, 32], sizes = [8, 32], strides = [1, 1]} : vector<8x128xf32> to vector<8x32xf32>
    %111 = arith.negf %110 : vector<8x32xf32>
    %112 = math.exp %111 : vector<8x32xf32>
    %cst_63 = arith.constant 1.000000e+00 : f32
    %113 = vector.broadcast %cst_63 : f32 to vector<8x32xf32>
    %114 = arith.addf %113, %112 : vector<8x32xf32>
    %115 = arith.divf %113, %114 : vector<8x32xf32>
    %116 = vector.extract_strided_slice %103 {offsets = [0, 64], sizes = [8, 32], strides = [1, 1]} : vector<8x128xf32> to vector<8x32xf32>
    %117 = math.tanh %116 : vector<8x32xf32>
    %118 = vector.extract_strided_slice %103 {offsets = [0, 96], sizes = [8, 32], strides = [1, 1]} : vector<8x128xf32> to vector<8x32xf32>
    %119 = arith.negf %118 : vector<8x32xf32>
    %120 = math.exp %119 : vector<8x32xf32>
    %cst_64 = arith.constant 1.000000e+00 : f32
    %121 = vector.broadcast %cst_64 : f32 to vector<8x32xf32>
    %122 = arith.addf %121, %120 : vector<8x32xf32>
    %123 = arith.divf %121, %122 : vector<8x32xf32>
    %c1_65 = arith.constant 1 : index
    %c0_66 = arith.constant 0 : index
    %c0_67 = arith.constant 0 : index
    %124 = vector.load %arg20[%c1_65, %c0_66, %c0_67] : memref<2x8x32xf32, #tpu.memory_space<vmem>>, vector<1x8x32xf32>
    %125 = vector.shape_cast %124 : vector<1x8x32xf32> to vector<8x32xf32>
    %126 = arith.mulf %115, %125 : vector<8x32xf32>
    %127 = arith.mulf %109, %117 : vector<8x32xf32>
    %128 = arith.addf %126, %127 : vector<8x32xf32>
    %129 = math.tanh %128 : vector<8x32xf32>
    %130 = arith.mulf %123, %129 : vector<8x32xf32>
    %c1_68 = arith.constant 1 : index
    %c0_69 = arith.constant 0 : index
    %c0_70 = arith.constant 0 : index
    %131 = vector.load %arg19[%c1_68, %c0_69, %c0_70] : memref<2x8x32xf32, #tpu.memory_space<vmem>>, vector<1x8x32xf32>
    %132 = vector.shape_cast %131 : vector<1x8x32xf32> to vector<8x32xf32>
    %133 = vector.shape_cast %130 : vector<8x32xf32> to vector<1x8x32xf32>
    tpu.vector_store %arg19[%c1_68, %c0_69, %c0_70], %133 {strides = array<i32>} : memref<2x8x32xf32, #tpu.memory_space<vmem>>, vector<1x8x32xf32>,
    %c1_71 = arith.constant 1 : index
    %c0_72 = arith.constant 0 : index
    %c0_73 = arith.constant 0 : index
    %134 = vector.load %arg20[%c1_71, %c0_72, %c0_73] : memref<2x8x32xf32, #tpu.memory_space<vmem>>, vector<1x8x32xf32>
    %135 = vector.shape_cast %134 : vector<1x8x32xf32> to vector<8x32xf32>
    %136 = vector.shape_cast %128 : vector<8x32xf32> to vector<1x8x32xf32>
    tpu.vector_store %arg20[%c1_71, %c0_72, %c0_73], %136 {strides = array<i32>} : memref<2x8x32xf32, #tpu.memory_space<vmem>>, vector<1x8x32xf32>,
    %c0_74 = arith.constant 0 : index
    %c0_75 = arith.constant 0 : index
    %c0_76 = arith.constant 0 : index
    %137 = vector.load %arg17[%c0_74, %c0_75, %c0_76] : memref<1x8x32xf32, #tpu.memory_space<vmem>>, vector<1x8x32xf32>
    %138 = vector.shape_cast %137 : vector<1x8x32xf32> to vector<8x32xf32>
    %139 = vector.shape_cast %130 : vector<8x32xf32> to vector<1x8x32xf32>
    tpu.vector_store %arg17[%c0_74, %c0_75, %c0_76], %139 {strides = array<i32>} : memref<1x8x32xf32, #tpu.memory_space<vmem>>, vector<1x8x32xf32>,
    %c0_77 = arith.constant 0 : index
    %c0_78 = arith.constant 0 : index
    %c0_79 = arith.constant 0 : index
    %140 = vector.load %arg18[%c0_77, %c0_78, %c0_79] : memref<1x8x16xf32, #tpu.memory_space<vmem>>, vector<1x8x16xf32>
    %141 = vector.shape_cast %140 : vector<1x8x16xf32> to vector<8x16xf32>
    %142 = vector.shape_cast %40 : vector<8x16xf32> to vector<1x8x16xf32>
    tpu.vector_store %arg18[%c0_77, %c0_78, %c0_79], %142 {strides = array<i32>} : memref<1x8x16xf32, #tpu.memory_space<vmem>>, vector<1x8x16xf32>,
    return
  }
  func.func @transform_0(%arg0: i32) -> (i32, i32, i32) {
    %c0_i32 = arith.constant 0 : i32
    %c0_i32_0 = arith.constant 0 : i32
    %c0_i32_1 = arith.constant 0 : i32
    %c0_i32_2 = arith.constant 0 : i32
    return %c0_i32, %c0_i32_0, %c0_i32_1 : i32, i32, i32
  }
  func.func @transform_1(%arg0: i32) -> (i32, i32, i32) {
    %c0_i32 = arith.constant 0 : i32
    %c0_i32_0 = arith.constant 0 : i32
    %c0_i32_1 = arith.constant 0 : i32
    %c0_i32_2 = arith.constant 0 : i32
    return %c0_i32, %c0_i32_0, %c0_i32_1 : i32, i32, i32
  }
  func.func @transform_2(%arg0: i32) -> (i32, i32, i32) {
    %c0_i32 = arith.constant 0 : i32
    %c0_i32_0 = arith.constant 0 : i32
    %c0_i32_1 = arith.constant 0 : i32
    return %arg0, %c0_i32, %c0_i32_0 : i32, i32, i32
  }
  func.func @transform_3(%arg0: i32) -> (i32, i32) {
    %c0_i32 = arith.constant 0 : i32
    %c0_i32_0 = arith.constant 0 : i32
    %c0_i32_1 = arith.constant 0 : i32
    return %c0_i32, %c0_i32_0 : i32, i32
  }
  func.func @transform_4(%arg0: i32) -> (i32, i32) {
    %c0_i32 = arith.constant 0 : i32
    %c0_i32_0 = arith.constant 0 : i32
    %c0_i32_1 = arith.constant 0 : i32
    return %c0_i32, %c0_i32_0 : i32, i32
  }
  func.func @transform_5(%arg0: i32) -> (i32, i32) {
    %c0_i32 = arith.constant 0 : i32
    %c0_i32_0 = arith.constant 0 : i32
    %c0_i32_1 = arith.constant 0 : i32
    return %c0_i32, %c0_i32_0 : i32, i32
  }
  func.func @transform_6(%arg0: i32) -> (i32, i32) {
    %c0_i32 = arith.constant 0 : i32
    %c0_i32_0 = arith.constant 0 : i32
    %c0_i32_1 = arith.constant 0 : i32
    return %c0_i32, %c0_i32_0 : i32, i32
  }
  func.func @transform_7(%arg0: i32) -> (i32, i32) {
    %c0_i32 = arith.constant 0 : i32
    %c0_i32_0 = arith.constant 0 : i32
    %c0_i32_1 = arith.constant 0 : i32
    return %c0_i32, %c0_i32_0 : i32, i32
  }
  func.func @transform_8(%arg0: i32) -> (i32, i32) {
    %c0_i32 = arith.constant 0 : i32
    %c0_i32_0 = arith.constant 0 : i32
    %c0_i32_1 = arith.constant 0 : i32
    return %c0_i32, %c0_i32_0 : i32, i32
  }
  func.func @transform_9(%arg0: i32) -> (i32, i32) {
    %c0_i32 = arith.constant 0 : i32
    %c0_i32_0 = arith.constant 0 : i32
    %c0_i32_1 = arith.constant 0 : i32
    return %c0_i32, %c0_i32_0 : i32, i32
  }
  func.func @transform_10(%arg0: i32) -> (i32, i32) {
    %c0_i32 = arith.constant 0 : i32
    %c0_i32_0 = arith.constant 0 : i32
    %c0_i32_1 = arith.constant 0 : i32
    return %c0_i32, %c0_i32_0 : i32, i32
  }
  func.func @transform_11(%arg0: i32) -> (i32, i32) {
    %c0_i32 = arith.constant 0 : i32
    %c0_i32_0 = arith.constant 0 : i32
    %c0_i32_1 = arith.constant 0 : i32
    return %c0_i32, %c0_i32_0 : i32, i32
  }
  func.func @transform_12(%arg0: i32) -> (i32, i32) {
    %c0_i32 = arith.constant 0 : i32
    %c0_i32_0 = arith.constant 0 : i32
    %c0_i32_1 = arith.constant 0 : i32
    return %c0_i32, %c0_i32_0 : i32, i32
  }
  func.func @transform_13(%arg0: i32) -> (i32, i32) {
    %c0_i32 = arith.constant 0 : i32
    %c0_i32_0 = arith.constant 0 : i32
    %c0_i32_1 = arith.constant 0 : i32
    return %c0_i32, %c0_i32_0 : i32, i32
  }
  func.func @transform_14(%arg0: i32) -> (i32, i32) {
    %c0_i32 = arith.constant 0 : i32
    %c0_i32_0 = arith.constant 0 : i32
    %c0_i32_1 = arith.constant 0 : i32
    return %c0_i32, %c0_i32_0 : i32, i32
  }
  func.func @transform_15(%arg0: i32) -> (i32, i32) {
    %c0_i32 = arith.constant 0 : i32
    %c0_i32_0 = arith.constant 0 : i32
    %c0_i32_1 = arith.constant 0 : i32
    return %c0_i32, %c0_i32_0 : i32, i32
  }
  func.func @transform_16(%arg0: i32) -> (i32, i32, i32) {
    %c0_i32 = arith.constant 0 : i32
    %c0_i32_0 = arith.constant 0 : i32
    %c0_i32_1 = arith.constant 0 : i32
    return %arg0, %c0_i32, %c0_i32_0 : i32, i32, i32
  }
  func.func @transform_17(%arg0: i32) -> (i32, i32, i32) {
    %c0_i32 = arith.constant 0 : i32
    %c0_i32_0 = arith.constant 0 : i32
    %c0_i32_1 = arith.constant 0 : i32
    return %arg0, %c0_i32, %c0_i32_0 : i32, i32, i32
  }
}

</mosaic_0001>

<bundles_post_ra>
// kernel: tpu_custom_call.1
= control target key start
LH: loop header
LB: loop body
LE: loop exit
PB: predicated region body
PF: predicated region fallthrough
CT: control target
= control target key end

     0   :  { %s4361_s0 = inlined_call_operand.hbm [shape: f32[8,16,32], index: 0, kind: input, shape index: {}]   ;;  %s4362_s1 = inlined_call_operand.hbm [shape: f32[8,16,32], index: 1, kind: input, shape index: {}]   ;;  %s4363_s2 = inlined_call_operand.hbm [shape: f32[7,8,32], index: 2, kind: input, shape index: {}]   ;;  %s4364_s3 = inlined_call_operand.hbm [shape: f32[32,64], index: 3, kind: input, shape index: {}]   ;;  %s4365_s4 = inlined_call_operand.vmem [shape: f32[1,64], index: 4, kind: input, shape index: {}]   ;;  %s4366_s5 = inlined_call_operand.hbm [shape: f32[32,64], index: 5, kind: input, shape index: {}]   ;;  %s4367_s6 = inlined_call_operand.vmem [shape: f32[1,64], index: 6, kind: input, shape index: {}]   ;;  %s4368_s7 = inlined_call_operand.vmem [shape: f32[1,32], index: 7, kind: input, shape index: {}]   ;;  %s4369_s8 = inlined_call_operand.<no memory space> [shape: f32[1,1], index: 8, kind: input, shape index: {}]   ;;  %s4370_s9 = inlined_call_operand.hbm [shape: f32[32,128], index: 9, kind: input, shape index: {}]   ;;  %s4371_s10 = inlined_call_operand.hbm [shape: f32[32,128], index: 10, kind: input, shape index: {}]   ;;  %s4372_s11 = inlined_call_operand.hbm [shape: f32[32,128], index: 11, kind: input, shape index: {}]   ;;  %s4373_s12 = inlined_call_operand.vmem [shape: f32[1,128], index: 12, kind: input, shape index: {}]   ;;  %s4374_s13 = inlined_call_operand.hbm [shape: f32[32,128], index: 13, kind: input, shape index: {}]   ;;  %s4375_s14 = inlined_call_operand.hbm [shape: f32[32,128], index: 14, kind: input, shape index: {}]   ;;  %s4376_s15 = inlined_call_operand.vmem [shape: f32[1,128], index: 15, kind: input, shape index: {}]   ;;  %s4377_s16 = inlined_call_operand.hbm [shape: f32[7,8,32], index: 16, kind: output, shape index: {0}]   ;;  %s4378_s17 = inlined_call_operand.hbm [shape: f32[7,8,16], index: 17, kind: output, shape index: {1}]  }
   0x1   :  { %4388 = sst [smem:[#allocation33_spill]] %s4361_s0  ;;  %v23_v0 = vstv %s4369_s8 }
   0x2   :  { %4389 = sst [smem:[#allocation34_spill]] %s4362_s1  ;;  %24 = vst [vmem:[#allocation4] sm:$0x1] %v23_v0 }
   0x3   :  { %4390 = sst [smem:[#allocation35_spill]] %s4364_s3 }
   0x4   :  { %4391 = sst [smem:[#allocation36_spill]] %s4366_s5 }
   0x5   :  { %4392 = sst [smem:[#allocation37_spill]] %s4370_s9 }
   0x6   :  { %4393 = sst [smem:[#allocation38_spill]] %s4371_s10 }
   0x7   :  { %4394 = sst [smem:[#allocation39_spill]] %s4372_s11 }
   0x8   :  { %4395 = sst [smem:[#allocation40_spill]] %s4374_s13 }
   0x9   :  { %4396 = sst [smem:[#allocation41_spill]] %s4375_s14 }
   0xa   :  { %4397 = sst [smem:[#allocation42_spill]] %s4377_s16 }
   0xb   :  { %4398 = sst [smem:[#allocation43_spill]] %s4378_s17 }
   0xc   :  { %25 = vsyncpa [#allocation6], 0 }
   0xd   :  { %26 = vsyncpa [#allocation9], 0 }
   0xe   :  { %27 = vsyncpa [#allocation13], 0 }
   0xf   :  { %28 = vsyncpa [#allocation16], 0 }
  0x10   :  { %29 = vsyncpa [#allocation19], 0 }
  0x11   :  { %30 = vsyncpa [#allocation7], 0 }
  0x12   :  { %32 = vsyncpa [#allocation7 + $0x1], 0 }
  0x13   :  { %33 = vsyncpa [#allocation23], 0 }
  0x14   :  { %35 = vsyncpa [#allocation23 + $0x1], 0  ;;  %s3536_s26 = smov 0   ;;  %s3538_s27 = smov 0  }
  0x15   :  { %s3540_s28 = smov 0   ;;  %s3542_s29 = smov 0  }
  0x16 LB: > { %s3419_s8 = smov [#allocation5]   ;;  %s3557_s30 = sadd.s32 4294967295, %s3417_s29   ;;  %s3417_s29 = sphi %s3542_s29, %s4442_s29   ;;  %s3413_s28 = sphi %s3540_s28, %s4441_s28   ;;  %s3409_s27 = sphi %s3538_s27, %s4440_s27   ;;  %s3405_s26 = sphi %s3536_s26, %s4439_s26  }
  0x17   : > { %s451_s0 = sshll.u32 %s3419_s8, 4  ;;  %p2652_p0 = scmp.ge.s32.totalorder %s3417_s29, 1  ;;  %s452_s0 = int_to_ptr.vmem [resolvable:$true] %s451_s0 }
  0x18   : > { %p4381_p1 = scmp.eq.s32.totalorder %s3557_s30, 0  ;;  %p439_p2 = scmp.lt.s32.totalorder %s3417_s29, 8 }
  0x19   : > { %s3420_s19 = smov [#allocation8]   ;;  %s3421_s21 = smov [#allocation12]  }
  0x1a   : > { %p3563_p4 = pnand %p2652_p0, %p439_p2  ;;  %s464_s1 = sshll.u32 %s3420_s19, 4  ;;  %s3575_s1 = int_to_ptr.vmem [resolvable:$true] %s464_s1 }
  0x1b   : > { %s493_s22 = sshll.u32 %s3421_s21, 4  ;;  %s3048_s24 = scalar_lea.vmem %s452_s0, 2048  ;;  %s3577_s22 = int_to_ptr.vmem [resolvable:$true] %s493_s22 }
  0x1c   : > { %s4399_s18 = scalar_select %p3563_p4, 1, 0 }
  0x1d   : > { %p2855_p5 = pneg %p3563_p4  ;;  %p3049_p8 = scmp.ne.s32.totalorder %s452_s0, %s3048_s24 }
  0x1e   : > { %p3056_p11 = scmp.lt.s32.totalorder %s452_s0, %s452_s0  ;;  %p3057_p12 = scmp.lt.s32.totalorder %s3048_s24, %s3048_s24 }
  0x1f   : > { %p3571_p6 = pnand %p2855_p5, %p4381_p1 }
  0x20   : > { %p3058_p13 = por %p3057_p12, %p3056_p11 }
  0x21   : > { %p3581_p7 = pneg %p3571_p6 }
  0x23   : > { %p3051_p9 = pnand %p3049_p8, %p3581_p7 }
  0x25   : > { %p3052_p10 = pneg %p3051_p9 }
  0x27   : > { %p3059_p0 = pnand %p3058_p13, %p3052_p10 }
  0x29   : > { %3062 = shalt.err (!%p3059_p0)
}
  0x2a   : > { %s3422_s25 = smov 128   ;;  %s3423_s8 = smov 8  }
  0x2b   : > { %s4402_s16 = sld [smem:[#allocation33_spill]]  ;;  %s3074_s17 = scalar_lea.vmem %s3575_s1, 2048 }
  0x2c   : > { %p3075_p2 = scmp.ne.s32.totalorder %s3575_s1, %s3074_s17  ;;  %p3082_p9 = scmp.lt.s32.totalorder %s3575_s1, %s3575_s1 }
  0x2d   : > { %p3083_p10 = scmp.lt.s32.totalorder %s3074_s17, %s3074_s17 }
  0x2e   : > { %p3077_p5 = pnand %p3075_p2, %p3581_p7 }
  0x2f   : > { %p3084_p11 = por %p3083_p10, %p3082_p9 }
  0x30   : > { %p3078_p8 = pneg %p3077_p5 }
  0x31   : > { %2858 = dma.hbm_to_vmem [thread:$0]  (!%p3571_p6), %s4402_s16, 2048, %s452_s0, [#allocation6], %s3422_s25, %s3422_s25, %s3423_s8  }
  0x32   : > { %p3085_p12 = pnand %p3084_p11, %p3078_p8 }
  0x34   : > { %3088 = shalt.err (!%p3085_p12)
}
  0x35   : > { %s4403_s16 = sld [smem:[#allocation34_spill]]  ;;  %s3100_s0 = scalar_lea.vmem %s3577_s22, 512 }
  0x36   : > { %p3101_p13 = scmp.ne.s32.totalorder %s3577_s22, %s3100_s0  ;;  %p3108_p5 = scmp.lt.s32.totalorder %s3577_s22, %s3577_s22 }
  0x37   : > { %p3109_p8 = scmp.lt.s32.totalorder %s3100_s0, %s3100_s0 }
  0x38   : > { %p3103_p0 = pnand %p3101_p13, %p3581_p7 }
  0x39   : > { %p3110_p9 = por %p3109_p8, %p3108_p5 }
  0x3a   : > { %p3104_p2 = pneg %p3103_p0 }
  0x3b   : > { %2861 = dma.hbm_to_vmem [thread:$0]  (!%p3571_p6), %s4403_s16, 2048, %s3575_s1, [#allocation9], %s3422_s25, %s3422_s25, %s3423_s8  }
  0x3c   : > { %p3111_p10 = pnand %p3110_p9, %p3104_p2 }
  0x3e   : > { %3114 = shalt.err (!%p3111_p10)
}
  0x3f   : > { %s4404_s5 = sld [smem:[#allocation36_spill]]  ;;  %s3424_s1 = smov [#allocation15]  }
  0x40   : > { %s528_s24 = sshll.u32 %s3424_s1, 4  ;;  %s3425_s19 = smov [#allocation18]   ;;  %s529_s24 = int_to_ptr.vmem [resolvable:$true] %s528_s24 }
  0x41   : > { %s557_s16 = sshll.u32 %s3425_s19, 4  ;;  %s3126_s0 = scalar_lea.vmem %s529_s24, 512  ;;  %s558_s16 = int_to_ptr.vmem [resolvable:$true] %s557_s16 }
  0x42   : > { %p3127_p11 = scmp.ne.s32.totalorder %s529_s24, %s3126_s0  ;;  %p3134_p0 = scmp.lt.s32.totalorder %s529_s24, %s529_s24 }
  0x43   : > { %p3135_p2 = scmp.lt.s32.totalorder %s3126_s0, %s3126_s0 }
  0x44   : > { %p3129_p12 = pnand %p3127_p11, %p3581_p7 }
  0x45   : > { %2867 = dma.hbm_to_vmem [thread:$0]  (!%p3571_p6), %s4404_s5, 512, %s3577_s22, [#allocation13], %s3422_s25, %s3422_s25, %s3423_s8  }
  0x46   : > { %p3130_p13 = pneg %p3129_p12  ;;  %p3136_p5 = por %p3135_p2, %p3134_p0 }
  0x48   : > { %p3137_p8 = pnand %p3136_p5, %p3130_p13 }
  0x4a   : > { %3140 = shalt.err (!%p3137_p8)
}
  0x4b   : > { %s4405_s10 = sld [smem:[#allocation38_spill]]  ;;  %s3152_s21 = scalar_lea.vmem %s558_s16, 512 }
  0x4c   : > { %p3153_p9 = scmp.ne.s32.totalorder %s558_s16, %s3152_s21  ;;  %p3160_p12 = scmp.lt.s32.totalorder %s558_s16, %s558_s16 }
  0x4d   : > { %p3161_p0 = scmp.lt.s32.totalorder %s3152_s21, %s3152_s21 }
  0x4e   : > { %p3155_p10 = pnand %p3153_p9, %p3581_p7 }
  0x4f   : > { %p3162_p13 = por %p3161_p0, %p3160_p12 }
  0x50   : > { %p3156_p11 = pneg %p3155_p10 }
  0x51   : > { %2873 = dma.hbm_to_vmem [thread:$0]  (!%p3571_p6), %s4405_s10, 512, %s529_s24, [#allocation16], %s3422_s25, %s3422_s25, %s3423_s8  }
  0x52   : > { %p3163_p2 = pnand %p3162_p13, %p3156_p11 }
  0x54   : > { %3166 = shalt.err (!%p3163_p2)
}
  0x55   : > { %s4406_s13 = sld [smem:[#allocation40_spill]]  ;;  %s3426_s24 = smov [#allocation11]  }
  0x56   : > { %s477_s0 = sshll.u32 %s3426_s24, 4  ;;  %s3427_s22 = smov [#allocation14]   ;;  %s478_s0 = int_to_ptr.vmem [resolvable:$true] %s477_s0 }
  0x57   : > { %s515_s17 = sshll.u32 %s3427_s22, 4  ;;  %s3178_s5 = scalar_lea.vmem %s478_s0, 512  ;;  %s516_s17 = int_to_ptr.vmem [resolvable:$true] %s515_s17 }
  0x58   : > { %p3179_p5 = scmp.ne.s32.totalorder %s478_s0, %s3178_s5  ;;  %p3186_p10 = scmp.lt.s32.totalorder %s478_s0, %s478_s0 }
  0x59   : > { %p3187_p11 = scmp.lt.s32.totalorder %s3178_s5, %s3178_s5 }
  0x5a   : > { %p3181_p8 = pnand %p3179_p5, %p3581_p7 }
  0x5b   : > { %2879 = dma.hbm_to_vmem [thread:$0]  (!%p3571_p6), %s4406_s13, 512, %s558_s16, [#allocation19], %s3422_s25, %s3422_s25, %s3423_s8  }
  0x5c   : > { %p3182_p9 = pneg %p3181_p8  ;;  %p3188_p12 = por %p3187_p11, %p3186_p10 }
  0x5e   : > { %p3189_p0 = pnand %p3188_p12, %p3182_p9 }
  0x60   : > { %3192 = shalt.err (!%p3189_p0)
}
  0x61   : > { %s4407_s3 = sld [smem:[#allocation35_spill]]  ;;  %s3204_s1 = scalar_lea.vmem %s516_s17, 512 }
  0x62   : > { %p3205_p13 = scmp.ne.s32.totalorder %s516_s17, %s3204_s1  ;;  %p3212_p8 = scmp.lt.s32.totalorder %s516_s17, %s516_s17 }
  0x63   : > { %p3213_p10 = scmp.lt.s32.totalorder %s3204_s1, %s3204_s1 }
  0x64   : > { %p3207_p2 = pnand %p3205_p13, %p3581_p7 }
  0x65   : > { %p3214_p9 = por %p3213_p10, %p3212_p8 }
  0x66   : > { %p3208_p5 = pneg %p3207_p2 }
  0x67   : > { %2864 = dma.hbm_to_vmem [thread:$0]  (!%p3571_p6), %s4407_s3, 512, %s478_s0, [#allocation9], %s3422_s25, %s3422_s25, %s3423_s8  }
  0x68   : > { %p3215_p11 = pnand %p3214_p9, %p3208_p5 }
  0x6a   : > { %3218 = shalt.err (!%p3215_p11)
}
  0x6b   : > { %s4408_s9 = sld [smem:[#allocation37_spill]]  ;;  %s3428_s24 = smov [#allocation17]  }
  0x6c   : > { %s541_s0 = sshll.u32 %s3428_s24, 4  ;;  %s3429_s22 = smov [#allocation20]   ;;  %s542_s0 = int_to_ptr.vmem [resolvable:$true] %s541_s0 }
  0x6d   : > { %s570_s16 = sshll.u32 %s3429_s22, 4  ;;  %s3230_s21 = scalar_lea.vmem %s542_s0, 512  ;;  %s571_s16 = int_to_ptr.vmem [resolvable:$true] %s570_s16 }
  0x6e   : > { %p3231_p12 = scmp.ne.s32.totalorder %s542_s0, %s3230_s21  ;;  %p3238_p2 = scmp.lt.s32.totalorder %s542_s0, %s542_s0 }
  0x6f   : > { %p3239_p5 = scmp.lt.s32.totalorder %s3230_s21, %s3230_s21 }
  0x70   : > { %p3233_p0 = pnand %p3231_p12, %p3581_p7 }
  0x71   : > { %2870 = dma.hbm_to_vmem [thread:$0]  (!%p3571_p6), %s4408_s9, 512, %s516_s17, [#allocation13], %s3422_s25, %s3422_s25, %s3423_s8  }
  0x72   : > { %p3234_p13 = pneg %p3233_p0  ;;  %p3240_p8 = por %p3239_p5, %p3238_p2 }
  0x74   : > { %p3241_p10 = pnand %p3240_p8, %p3234_p13 }
  0x76   : > { %3244 = shalt.err (!%p3241_p10)
}
  0x77   : > { %s4409_s11 = sld [smem:[#allocation39_spill]]  ;;  %s3256_s5 = scalar_lea.vmem %s571_s16, 512 }
  0x78   : > { %p3257_p9 = scmp.ne.s32.totalorder %s571_s16, %s3256_s5  ;;  %p3264_p0 = scmp.lt.s32.totalorder %s571_s16, %s571_s16 }
  0x79   : > { %p3265_p2 = scmp.lt.s32.totalorder %s3256_s5, %s3256_s5 }
  0x7a   : > { %p3259_p11 = pnand %p3257_p9, %p3581_p7 }
  0x7b   : > { %p3266_p13 = por %p3265_p2, %p3264_p0 }
  0x7c   : > { %p3260_p12 = pneg %p3259_p11 }
  0x7d   : > { %2876 = dma.hbm_to_vmem [thread:$0]  (!%p3571_p6), %s4409_s11, 512, %s542_s0, [#allocation16], %s3422_s25, %s3422_s25, %s3423_s8  }
  0x7e   : > { %p3267_p5 = pnand %p3266_p13, %p3260_p12 }
  0x80   : > { %3270 = shalt.err (!%p3267_p5)
}
  0x81   : > { %s4410_s14 = sld [smem:[#allocation41_spill]]  ;;  %s2651_s20 = sadd.s32 4294967294, %s3417_s29  }
  0x82   : > { %s3687_s23 = sadd.s32 1, %s3417_s29   ;;  %s90_s0 = sadd.s32 1, %s3413_s28 }
  0x83   : > { %s87_s22 = ssub.s32 %s3417_s29, %s3687_s23  ;;  %p97_p7 = scmp.ne.s32.totalorder %s3413_s28, %s3409_s27 }
  0x84   : > { %p88_p8 = scmp.eq.s32.totalorder %s87_s22, 0  ;;  %p98_p10 = scmp.eq.s32.totalorder %s3417_s29, 0 }
  0x85   : > { %p103_p9 = scmp.ne.s32.totalorder %s3409_s27, %s3405_s26  ;;  %p400_p11 = scmp.eq.s32.totalorder %s3557_s30, 6 }
  0x86   : > { %s3699_s21 = scalar_select %p88_p8, %s3413_s28, %s90_s0  }
  0x87   : > { %2882 = dma.hbm_to_vmem [thread:$0]  (!%p3571_p6), %s4410_s14, 512, %s571_s16, [#allocation19], %s3422_s25, %s3422_s25, %s3423_s8  }
  0x88   : > { %p99_p12 = por %p98_p10, %p97_p7  ;;  %p3703_p0 = por %p4381_p1, %p103_p9 }
  0x89   : > { %p3707_p6 = por %p400_p11, %p97_p7  ;;  %p406_p2 = scmp.eq.s32.totalorder %s2651_s20, 6 }
  0x8a   : > { %s4411_s25 = scalar_select %p3703_p0, 1, 0 }
  0x8b   : > { %s4412_s8 = scalar_select %p3707_p6, 1, 0 }
  0x8c   : > { %p2903_p13 = scmp.lt.s32.totalorder %s3417_s29, 7  ;;  %s587_s16 = sand.u32 1, %s3417_s29  }
  0x8d   : > { %p3713_p5 = por %p406_p2, %p103_p9  ;;  %s589_s1 = sand.u32 1, %s3413_s28  }
  0x8e   : > { %s2664_s5 = sshll.u32 %s3417_s29, 7  ;;  %s2663_s19 = sshll.u32 %s589_s1, 3 }
  0x8f   : > { %s4413_s17 = scalar_select %p3713_p5, 1, 0 }
  0x90   : > { %s3722_s22 = scalar_lea.hbm %s4363_s2, %s2664_s5  ;;  %p3724_p7 = pnand %p2903_p13, %p99_p12 }
  0x91   : > { %s591_s20 = scalar_lea.vmem [#allocation10], %s2663_s19  ;;  %s588_s10 = scalar_lea.sflag [#allocation6], %s587_s16 }
  0x92   : > { %s598_s9 = sshll.u32 %s591_s20, 4  ;;  %s3271_s11 = scalar_lea.hbm %s3722_s22, 128  ;;  %s599_s9 = int_to_ptr.vmem [resolvable:$true] %s598_s9 }
  0x93   : > { %p3272_p8 = scmp.ne.s32.totalorder %s3722_s22, %s3271_s11  ;;  %p3273_p10 = pneg %p3724_p7 }
  0x94   : > { %s3276_s24 = scalar_lea.hbm %s4363_s2, 896  ;;  %p3277_p12 = scmp.lt.s32.totalorder %s3722_s22, %s4363_s2 }
  0x95   : > { %p3274_p9 = pnand %p3273_p10, %p3272_p8  ;;  %p3278_p2 = scmp.lt.s32.totalorder %s3276_s24, %s3271_s11 }
  0x97   : > { %p3275_p11 = pneg %p3274_p9  ;;  %p3279_p13 = por %p3278_p2, %p3277_p12 }
  0x99   : > { %p3280_p3 = pnand %p3279_p13, %p3275_p11 }
  0x9b   : > { %3283 = shalt.err (!%p3280_p3)
}
  0x9c   : > { %s3284_s19 = scalar_lea.vmem %s599_s9, 128  ;;  %s3430_s16 = smov [#allocation10]  }
  0x9d   : > { %p3285_p1 = scmp.ne.s32.totalorder %s599_s9, %s3284_s19  ;;  %s3289_s20 = sshll.u32 %s3430_s16, 4  ;;  %s3290_s20 = int_to_ptr.vmem [resolvable:$false] %s3289_s20 }
  0x9e   : > { %s3291_s14 = scalar_lea.vmem %s3290_s20, 256  ;;  %p3292_p8 = scmp.lt.s32.totalorder %s599_s9, %s3290_s20 }
  0x9f   : > { %p3287_p5 = pnand %p3285_p1, %p3273_p10  ;;  %p3293_p9 = scmp.lt.s32.totalorder %s3291_s14, %s3284_s19 }
  0xa1   : > { %p3288_p6 = pneg %p3287_p5  ;;  %p3294_p0 = por %p3293_p9, %p3292_p8 }
  0xa3   : > { %p3295_p4 = pnand %p3294_p0, %p3288_p6 }
  0xa5   : > { %3298 = shalt.err (!%p3295_p4)
}
  0xa6   : > { %2886 = dma.hbm_to_vmem [thread:$0]  (!%p3724_p7), %s3722_s22, 128, %s599_s9, %s588_s10  }
  0xa7   : > { %p4415_p11 = scmp.ne.s32.totalorder %s4399_s18, 0 }
  0xa8   : > { %p4416_p3 = scmp.eq.s32.totalorder (!%p4415_p11), %s3557_s30, 0 }
  0xa9   : > { %607 = sbr.rel (%p4415_p11) target bundleno = 3266 (0xcc2), region = 84 }
  0xae   : > { %3368 = dma.done.wait (%p4416_p3), [#allocation6], 2048   ;;  %p4417_p1 = pmov %p4416_p3 }
  0xb0   : > { %3370 = vsyncadd (%p4417_p1), [#allocation6], 4294965248  ;;  %p4418_p5 = pmov %p4417_p1 }
  0xb1   : > { %p4419_p10 = pmov %p4417_p1 }
  0xb2   : > { %3372 = dma.done.wait (%p4418_p5), [#allocation9], 2048  }
  0xb3   : > { %3374 = vsyncadd (%p4419_p10), [#allocation9], 4294965248  ;;  %s617_s3 = sand.u32 1, %s3557_s30   ;;  %s3754_s9 = sand.u32 1, %s3409_s27  }
  0xb4   : > { %s3757_s10 = sshll.u32 %s3754_s9, 3  ;;  %s618_s11 = scalar_lea.sflag [#allocation6], %s617_s3 }
  0xb5   : > { %s621_s13 = scalar_lea.vmem [#allocation10], %s3757_s10  ;;  %p4420_p4 = scmp.ne.s32.totalorder %s4411_s25, 0 }
  0xb7   : > { %3376 = dma.done.wait (%p4420_p4), %s618_s11, 128  }
  0xb8   : > { %3378 = vsyncadd (%p4420_p4), %s618_s11, 4294967168  ;;  %p4421_p0 = pmov %p4417_p1 }
  0xba   : > { %3380 = dma.done.wait (%p4421_p0), [#allocation9], 512   ;;  %p4422_p6 = pmov %p4421_p0 }
  0xbb   : > { %p4423_p7 = pmov %p4421_p0 }
  0xbc   : > { %3382 = vsyncadd (%p4422_p6), [#allocation9], 4294966784 }
  0xbd   : > { %3384 = dma.done.wait (%p4423_p7), [#allocation13], 1024   ;;  %p4424_p12 = pmov %p4421_p0 }
  0xbe   : > { %p4425_p2 = pmov %p4421_p0 }
  0xbf   : > { %3386 = vsyncadd (%p4424_p12), [#allocation13], 4294966272 }
  0xc0   : > { %3388 = dma.done.wait (%p4425_p2), [#allocation16], 1024   ;;  %p4426_p13 = pmov %p4421_p0 }
  0xc1   : > { %p4427_p8 = pmov %p4421_p0 }
  0xc2   : > { %3390 = vsyncadd (%p4426_p13), [#allocation16], 4294966272 }
  0xc3   : > { %3392 = dma.done.wait (%p4427_p8), [#allocation19], 1024   ;;  %p4428_p9 = pmov %p4421_p0 }
  0xc4   : > { %s704_s18 = scalar_lea.vmem [#allocation22], %s3757_s10  ;;  %p4429_p11 = scmp.ne.s32.totalorder %s3557_s30, 0 }
  0xc5   : > { %3394 = vsyncadd (%p4428_p9), [#allocation19], 4294966272  ;;  %s3433_s1 = smov (!%p4429_p11), 96  }
  0xc6   : > { %708 = sbr.rel (%p4429_p11) target bundleno = 545 (0x221), region = 128 }
  0xcb   : > { %v810_v1 = vld [vmem:[#allocation11 + $0x18] sm:$0xff]  ;;  %v809_v2 = vld [vmem:[#allocation11 + $0x10] sm:$0xff]  ;;  %vm725_vm0 = vcmask 261120   ;;  %v3431_v3 = vmov 0.0   ;;  %v808_v4 = vld [vmem:[#allocation11 + $0x8] sm:$0xff]  ;;  %vm3432_vm1 = vmmov 0  }
  0xcc   : > { %2736 = vmatprep.subr.mxu0 %v3431_v3  ;;  %2744 = vmatprep.mubr.msk.f32.mxu0 %vm3432_vm1, %v3431_v3  ;;  %v709_v5 = vld [vmem:[#allocation5] sm:$0xff]  ;;  %v710_v6 = vld [vmem:[#allocation5 + $0x8] sm:$0xff]  ;;  %v711_v7 = vld [vmem:[#allocation5 + $0x10] sm:$0xff]  ;;  %vm826_vm2 = vcmask 1041409   ;;  %vm828_vm3 = vcmask 1042434   ;;  %vm830_vm4 = vcmask 1043459  }
  0xcd   : > { %2737 = vmatpush3.msra.mxu0 %v810_v1  ;;  %v712_v8 = vld [vmem:[#allocation5 + $0x18] sm:$0xff]  ;;  %v713_v9 = vld [vmem:[#allocation5 + $0x20] sm:$0xff]  ;;  %v726_v10 = vsel %vm725_vm0, %v709_v5, 0.0  ;;  %v727_v11 = vsel %vm725_vm0, %v710_v6, 0.0  ;;  %v807_v12 = vld [vmem:[#allocation11] sm:$0xff]  ;;  %v735_v17 = vsel %vm725_vm0, %v711_v7, 0.0 }
  0xce   : > { %2738 = vmatprep.subr.mxu0 %v3431_v3  ;;  %v714_v13 = vld [vmem:[#allocation5 + $0x28] sm:$0xff]  ;;  %v715_v14 = vld [vmem:[#allocation5 + $0x30] sm:$0xff]  ;;  %v716_v15 = vld [vmem:[#allocation5 + $0x38] sm:$0xff]  ;;  %v728_v16 = vadd.f32 %v727_v11, %v726_v10  ;;  %v736_v18 = vsel %vm725_vm0, %v712_v8, 0.0  ;;  %v744_v19 = vsel %vm725_vm0, %v713_v9, 0.0  ;;  %vm832_vm5 = vcmask 1044484  }
  0xcf   : > { %2739 = vmatpush3.msra.mxu0 %v809_v2  ;;  %v717_v20 = vld [vmem:[#allocation5 + $0x40] sm:$0xff]  ;;  %v718_v21 = vld [vmem:[#allocation5 + $0x48] sm:$0xff]  ;;  %v719_v22 = vld [vmem:[#allocation5 + $0x50] sm:$0xff]  ;;  %v737_v23 = vadd.f32 %v736_v18, %v735_v17  ;;  %v745_v24 = vsel %vm725_vm0, %v714_v13, 0.0  ;;  %v753_v25 = vsel %vm725_vm0, %v715_v14, 0.0  ;;  %v754_v26 = vsel %vm725_vm0, %v716_v15, 0.0 }
  0xd0   : > { %2740 = vmatprep.subr.mxu0 %v3431_v3  ;;  %v720_v27 = vld [vmem:[#allocation5 + $0x58] sm:$0xff]  ;;  %v721_v28 = vld [vmem:[#allocation5 + $0x60] sm:$0xff]  ;;  %v722_v29 = vld [vmem:[#allocation5 + $0x68] sm:$0xff]  ;;  %v729_v30 = vrot.slane %v728_v16, 4  ;;  %v746_v31 = vadd.f32 %v745_v24, %v744_v19  ;;  %v755_v32 = vadd.f32 %v754_v26, %v753_v25  ;;  %v762_v33 = vsel %vm725_vm0, %v717_v20, 0.0 }
  0xd1   : > { %2741 = vmatpush3.msra.mxu0 %v808_v4  ;;  %v738_v34 = vrot.slane %v737_v23, 4  ;;  %v763_v35 = vsel %vm725_vm0, %v718_v21, 0.0  ;;  %v771_v36 = vsel %vm725_vm0, %v719_v22, 0.0  ;;  %v772_v37 = vsel %vm725_vm0, %v720_v27, 0.0  ;;  %v723_v38 = vld [vmem:[#allocation5 + $0x70] sm:$0xff]  ;;  %v724_v47 = vld [vmem:[#allocation5 + $0x78] sm:$0xff] }
  0xd2   : > { %2742 = vmatprep.subr.mxu0 %v3431_v3  ;;  %v730_v39 = vadd.f32 %v729_v30, %v728_v16  ;;  %v747_v40 = vrot.slane %v746_v31, 4  ;;  %v756_v41 = vrot.slane %v755_v32, 4  ;;  %v764_v42 = vadd.f32 %v763_v35, %v762_v33 }
  0xd3   : > { %2743 = vmatpush3.msra.mxu0 %v807_v12  ;;  %v739_v43 = vadd.f32 %v738_v34, %v737_v23  ;;  %v773_v44 = vadd.f32 %v772_v37, %v771_v36  ;;  %v780_v45 = vsel %vm725_vm0, %v721_v28, 0.0  ;;  %v781_v46 = vsel %vm725_vm0, %v722_v29, 0.0 }
  0xd4   : > { %v731_v48 = vrot.slane %v730_v39, 2  ;;  %v748_v49 = vadd.f32 %v747_v40, %v746_v31  ;;  %v757_v50 = vadd.f32 %v756_v41, %v755_v32  ;;  %v765_v51 = vrot.slane %v764_v42, 4 }
  0xd5   : > { %v740_v52 = vrot.slane %v739_v43, 2  ;;  %v774_v53 = vrot.slane %v773_v44, 4  ;;  %v782_v54 = vadd.f32 %v781_v46, %v780_v45  ;;  %v789_v55 = vsel %vm725_vm0, %v723_v38, 0.0  ;;  %v2679_v45 = vld [vmem:[%s4365_s4] ss:$0 sm:$0xff] }
  0xd6   : > { %v732_v56 = vadd.f32 %v731_v48, %v730_v39  ;;  %v749_v57 = vrot.slane %v748_v49, 2  ;;  %v758_v58 = vrot.slane %v757_v50, 2  ;;  %v766_v59 = vadd.f32 %v765_v51, %v764_v42 }
  0xd7   : > { %v741_v60 = vadd.f32 %v740_v52, %v739_v43  ;;  %v775_v61 = vadd.f32 %v774_v53, %v773_v44  ;;  %v783_v62 = vrot.slane %v782_v54, 4  ;;  %v790_v63 = vsel %vm725_vm0, %v724_v47, 0.0 }
  0xd8   : > { %v733_v0 = vrot.slane %v732_v56, 1  ;;  %v750_v1 = vadd.f32 %v749_v57, %v748_v49  ;;  %v759_v2 = vadd.f32 %v758_v58, %v757_v50  ;;  %v767_v3 = vrot.slane %v766_v59, 2 }
  0xd9   : > { %v742_v4 = vrot.slane %v741_v60, 1  ;;  %v776_v5 = vrot.slane %v775_v61, 2  ;;  %v784_v6 = vadd.f32 %v783_v62, %v782_v54  ;;  %v791_v7 = vadd.f32 %v790_v63, %v789_v55 }
  0xda   : > { %v734_v8 = vadd.f32 %v733_v0, %v732_v56  ;;  %v751_v9 = vrot.slane %v750_v1, 1  ;;  %v760_v10 = vrot.slane %v759_v2, 1  ;;  %v768_v11 = vadd.f32 %v767_v3, %v766_v59 }
  0xdb   : > { %v743_v12 = vadd.f32 %v742_v4, %v741_v60  ;;  %v777_v13 = vadd.f32 %v776_v5, %v775_v61  ;;  %v785_v14 = vrot.slane %v784_v6, 2  ;;  %v792_v15 = vrot.slane %v791_v7, 4 }
  0xdc   : > { %v752_v16 = vadd.f32 %v751_v9, %v750_v1  ;;  %v761_v17 = vadd.f32 %v760_v10, %v759_v2  ;;  %v769_v18 = vrot.slane %v768_v11, 1  ;;  %v799_v19 = vmul.f32 0.0625, %v734_v8 }
  0xdd   : > { %v778_v20 = vrot.slane %v777_v13, 1  ;;  %v786_v21 = vadd.f32 %v785_v14, %v784_v6  ;;  %v793_v22 = vadd.f32 %v792_v15, %v791_v7  ;;  %v800_v23 = vmul.f32 0.0625, %v743_v12 }
  0xde   : > { %v770_v24 = vadd.f32 %v769_v18, %v768_v11  ;;  %v801_v25 = vmul.f32 0.0625, %v752_v16  ;;  %v802_v26 = vmul.f32 0.0625, %v761_v17  ;;  %vm834_vm6 = vcmask 1045509  }
  0xdf   : > { %v779_v27 = vadd.f32 %v778_v20, %v777_v13  ;;  %v787_v28 = vrot.slane %v786_v21, 1  ;;  %v794_v29 = vrot.slane %v793_v22, 2  ;;  %v827_v30 = vsel %vm826_vm2, %v800_v23, %v799_v19 }
  0xe0   : > { %v803_v31 = vmul.f32 0.0625, %v770_v24  ;;  %v829_v32 = vsel %vm828_vm3, %v801_v25, %v827_v30  ;;  %vm836_vm7 = vcmask 1046534   ;;  %vm838_vm8 = vcmask 1047559  }
  0xe1   : > { %v788_v33 = vadd.f32 %v787_v28, %v786_v21  ;;  %v795_v34 = vadd.f32 %v794_v29, %v793_v22  ;;  %v804_v35 = vmul.f32 0.0625, %v779_v27  ;;  %v831_v36 = vsel %vm830_vm4, %v802_v26, %v829_v32 }
  0xe2   : > { %v833_v37 = vsel %vm832_vm5, %v803_v31, %v831_v36 }
  0xe3   : > { %v796_v38 = vrot.slane %v795_v34, 1  ;;  %v805_v39 = vmul.f32 0.0625, %v788_v33  ;;  %v835_v40 = vsel %vm834_vm6, %v804_v35, %v833_v37 }
  0xe5   : > { %v797_v41 = vadd.f32 %v796_v38, %v795_v34  ;;  %v837_v42 = vsel %vm836_vm7, %v805_v39, %v835_v40 }
  0xe7   : > { %v806_v43 = vmul.f32 0.0625, %v797_v41 }
  0xe9   : > { %v839_v44 = vsel %vm838_vm8, %v806_v43, %v837_v42 }
  0xea   : > { %2745 = vmatmul.mubr.msk.f32.vlgmr.msra.gmra.mxu0 %vm725_vm0, %v839_v44 }
 0x1aa   : > { %v908_v46 = vpop.f32.mrf.mxu0 }
 0x1ab   : > { %v909_v47 = vadd.f32 %v2679_v45, %v908_v46 }
 0x1ac   : > { %v2746_v48 = vpop.f32.mrf.mxu0 }
 0x1ad   : > { %912 = vst.msk [vmem:[#allocation2] sm:$0xff] %vm725_vm0, %v909_v47  ;;  %919 = vst.msk [vmem:[#allocation2 + $0x8] sm:$0xff] %vm725_vm0, %v909_v47  ;;  %914 = vrot.lane.b32.xlu0 %v909_v47, %s3433_s1 }
 0x21f   : > { %v915_v49 = vpop.permute.xlu0 %914 }
 0x220   : > { %917 = vst.msk [vmem:[#allocation3] sm:$0xff] %vm725_vm0, %v915_v49  ;;  %921 = vst.msk [vmem:[#allocation3 + $0x8] sm:$0xff] %vm725_vm0, %v915_v49 }
 0x221 PF: > { %v943_v50 = vld [vmem:[#allocation12 + $0x18] sm:$0xff]  ;;  %v3434_v51 = vmov 0.0   ;;  %v942_v52 = vld [vmem:[#allocation12 + $0x10] sm:$0xff]  ;;  %vm3435_vm9 = vmmov 0   ;;  %v941_v53 = vld [vmem:[#allocation12 + $0x8] sm:$0xff]  ;;  %vm951_vm10 = vcmask 261120   ;;  %v1052_v59 = vlaneseq }
 0x222   : > { %2747 = vmatprep.subr.mxu0 %v3434_v51  ;;  %2755 = vmatprep.mubr.msk.f32.mxu0 %vm3435_vm9, %v3434_v51  ;;  %v940_v54 = vld [vmem:[#allocation12] sm:$0xff]  ;;  %v939_v55 = vld [vmem:[#allocation2 + $0x8] sm:$0xff]  ;;  %v3436_v56 = vmov 0   ;;  %v3437_v57 = vmov 1966171168   ;;  %v1034_v15 = vld [vmem:[#allocation8 + $0x18] sm:$0xff] }
 0x223   : > { %2748 = vmatpush3.msra.mxu0 %v943_v50  ;;  %2758 = vmatprep.subr.mxu1 %v3434_v51  ;;  %v1050_v58 = vunpack.c.l.s4 %v3437_v57  ;;  %v3825_v61 = vshrl.u32 %v1052_v59, 7  ;;  %v2681_v62 = vld [vmem:[%s4367_s6] ss:$0 sm:$0xff]  ;;  %v1031_v9 = vld [vmem:[#allocation8] sm:$0xff]  ;;  %v1032_v10 = vld [vmem:[#allocation8 + $0x8] sm:$0xff]  ;;  %vm1293_vm11 = vcmask 130112  }
 0x224   : > { %2749 = vmatprep.subr.mxu0 %v3434_v51  ;;  %2766 = vmatprep.mubr.msk.f32.mxu1 %vm3435_vm9, %v3434_v51  ;;  %v1033_v14 = vld [vmem:[#allocation8 + $0x10] sm:$0xff]  ;;  %v1035_v20 = vld [vmem:[#allocation8 + $0x20] sm:$0xff]  ;;  %v3845_v23 = vld [vmem:[%s4368_s7] ss:$0 sm:$0xff]  ;;  %vm1358_vm12 = vcmask 1041409   ;;  %vm1360_vm13 = vcmask 1042434  }
 0x225   : > { %2750 = vmatpush3.msra.mxu0 %v942_v52  ;;  %2967 = vset.pattern.permute.xlu0 %v3436_v56  ;;  %v1051_v60 = vunpack.c.0.s8 %v1050_v58  ;;  %v3837_v5 = vsub.s32 0, %v3825_v61  ;;  %v1036_v24 = vld [vmem:[#allocation8 + $0x28] sm:$0xff]  ;;  %v1039_v30 = vld [vmem:[#allocation8 + $0x40] sm:$0xff]  ;;  %v1037_v45 = vld [vmem:[#allocation8 + $0x30] sm:$0xff]  ;;  %vm1362_vm14 = vcmask 1043459   ;;  %vm1364_vm15 = vcmask 1044484  }
 0x226   : > { %2751 = vmatprep.subr.mxu0 %v3434_v51  ;;  %2968 = vset.pattern.permute.xlu1 %v3436_v56  ;;  %v1040_v37 = vld [vmem:[#allocation8 + $0x48] sm:$0xff]  ;;  %v1041_v58 = vld [vmem:[#allocation8 + $0x50] sm:$0xff]  ;;  %vm1366_vm0 = vcmask 1045509   ;;  %vm1368_vm1 = vcmask 1046534   ;;  %vm1370_vm2 = vcmask 1047559   ;;  %vm1373_vm3 = vcmask 130048  }
 0x227   : > { %2752 = vmatpush3.msra.mxu0 %v941_v53  ;;  %v1054_v63 = vsub.s32 %v1051_v60, %v3825_v61  ;;  %v1038_v53 = vld [vmem:[#allocation8 + $0x38] sm:$0xff]  ;;  %s4387_s16 = smov 32   ;;  %s4386_s20 = smov 96  }
 0x228   : > { %2753 = vmatprep.subr.mxu0 %v3434_v51  ;;  %s4385_s1 = sshll.u32 %s3557_s30, 7  ;;  %s4430_s0 = sld [smem:[#allocation43_spill]] }
 0x229   : > { %2754 = vmatpush3.msra.mxu0 %v940_v54  ;;  %s2464_s3 = sshll.u32 %s704_s18, 4  ;;  %s2438_s11 = scalar_lea.sflag [#allocation23], %s3754_s9  ;;  %s2465_s3 = int_to_ptr.vmem [resolvable:$true] %s2464_s3 }
 0x22a   : > { %2756 = vmatmul.mubr.msk.f32.vlgmr.msra.gmra.mxu0 %vm951_vm10, %v939_v55  ;;  %2769 = vmatprep.subr.mxu0 %v3434_v51  ;;  %s3299_s25 = scalar_lea.vmem %s2465_s3, 128  ;;  %p4431_p1 = scmp.ne.s32.totalorder %s4412_s8, 0 }
 0x22b   : > { %2777 = vmatprep.mubr.msk.f32.mxu0 %vm3435_vm9, %v3434_v51  ;;  %p3300_p3 = scmp.ne.s32.totalorder %s2465_s3, %s3299_s25  ;;  %s3441_s22 = smov [#allocation22]  }
 0x22c   : > { %s3303_s14 = sshll.u32 %s3441_s22, 4  ;;  %s3304_s14 = int_to_ptr.vmem [resolvable:$false] %s3303_s14 }
 0x22d   : > { %p3301_p5 = pnand %p3300_p3, %p4431_p1  ;;  %p3306_p4 = scmp.lt.s32.totalorder %s2465_s3, %s3304_s14 }
 0x22e   : > { %s2462_s19 = scalar_lea.hbm %s4430_s0, %s4385_s1 }
 0x22f   : > { %p3302_p10 = pneg %p3301_p5 }
 0x2ea   : > { %v1021_v0 = vpop.f32.mrf.mxu0 }
 0x2eb   : > { %v3831_v1 = vadd.f32 %v2681_v62, %v1021_v0 }
 0x2ec   : > { %v2757_v2 = vpop.f32.mrf.mxu0 }
 0x2ed   : > { %v1048_v3 = vcombine.high %v3831_v1, %v3831_v1  ;;  %v1055_v4 = vrot.slane %v3831_v1, %v1054_v63 }
 0x2ef   : > { %v1062_v6 = vrot.slane %v1048_v3, %v1054_v63  ;;  %v1063_v7 = vcombine.high %v1055_v4, %v1055_v4  ;;  %v1071_v8 = vrot.slane %v1055_v4, %v1054_v63  ;;  %v1042_v4 = vld [vmem:[#allocation8 + $0x58] sm:$0xff] }
 0x2f1   : > { %v1100_v11 = vrot.slane %v1071_v8, %v3837_v5  ;;  %v1085_v12 = vrot.slane %v1063_v7, %v1054_v63  ;;  %v1093_v13 = vcombine.high %v1071_v8, %v1071_v8  ;;  %v1078_v16 = vrot.slane %v1062_v6, %v1054_v63 }
 0x2f2   : > { %v1064_v22 = vcombine.high %v1062_v6, %v1062_v6 }
 0x2f3   : > { %v1137_v17 = vadd.f32 %v1100_v11, %v1031_v9  ;;  %v1104_v18 = vrot.slane %v1085_v12, %v3837_v5  ;;  %v1138_v19 = vadd.f32 %v1100_v11, %v1032_v10  ;;  %v1108_v21 = vrot.slane %v1093_v13, %v3837_v5  ;;  %v1043_v10 = vld [vmem:[#allocation8 + $0x60] sm:$0xff] }
 0x2f4   : > { %v1116_v25 = vrot.slane %v1078_v16, %v3837_v5  ;;  %v1095_v32 = vcombine.high %v1085_v12, %v1085_v12  ;;  %v1092_v43 = vrot.slane %v1064_v22, %v1054_v63  ;;  %v1094_v57 = vcombine.high %v1078_v16, %v1078_v16  ;;  %v1044_v16 = vld [vmem:[#allocation8 + $0x68] sm:$0xff] }
 0x2f5   : > { %v1153_v26 = vmax.f32 %v1137_v17, 0.0  ;;  %v1139_v27 = vadd.f32 %v1104_v18, %v1033_v14  ;;  %v1154_v28 = vmax.f32 %v1138_v19, 0.0  ;;  %v1140_v29 = vadd.f32 %v1104_v18, %v1034_v15 }
 0x2f6   : > { %v1141_v31 = vadd.f32 %v1108_v21, %v1035_v20  ;;  %v1142_v36 = vadd.f32 %v1108_v21, %v1036_v24  ;;  %v1145_v39 = vadd.f32 %v1116_v25, %v1039_v30  ;;  %v1146_v44 = vadd.f32 %v1116_v25, %v1040_v37  ;;  %v1045_v21 = vld [vmem:[#allocation8 + $0x70] sm:$0xff] }
 0x2f7   : > { %v1176_v33 = vmul.f32 %v3845_v23, %v1153_v26  ;;  %v1155_v34 = vmax.f32 %v1139_v27, 0.0  ;;  %v1156_v35 = vmax.f32 %v1140_v29, 0.0  ;;  %v1177_v42 = vmul.f32 %v3845_v23, %v1154_v28  ;;  %v1046_v27 = vld [vmem:[#allocation8 + $0x78] sm:$0xff] }
 0x2f8   : > { %v1157_v38 = vmax.f32 %v1141_v31, 0.0  ;;  %v1158_v48 = vmax.f32 %v1142_v36, 0.0  ;;  %v1112_v49 = vrot.slane %v1095_v32, %v3837_v5  ;;  %v1161_v52 = vmax.f32 %v1145_v39, 0.0 }
 0x2f9   : > { %v1192_v40 = vsel %vm951_vm10, %v1176_v33, 0.0  ;;  %v1178_v41 = vmul.f32 %v3845_v23, %v1155_v34  ;;  %v1179_v47 = vmul.f32 %v3845_v23, %v1156_v35  ;;  %v1195_v54 = vsel %vm951_vm10, %v1177_v42, 0.0 }
 0x2fa   : > { %1193 = vadd.xlane.f32.xlu0 %v1192_v40  ;;  %v1180_v50 = vmul.f32 %v3845_v23, %v1157_v38  ;;  %v1143_v55 = vadd.f32 %v1112_v49, %v1037_v45  ;;  %v1120_v56 = vrot.slane %v1092_v43, %v3837_v5  ;;  %v1181_v62 = vmul.f32 %v3845_v23, %v1158_v48  ;;  %v2685_v48 = vld [vmem:[#allocation4] ss:$0 sm:$0xff] }
 0x2fb   : > { %v1198_v46 = vsel %vm951_vm10, %v1178_v41, 0.0  ;;  %v1201_v60 = vsel %vm951_vm10, %v1179_v47, 0.0  ;;  %v1162_v63 = vmax.f32 %v1146_v44, 0.0  ;;  %v1144_v0 = vadd.f32 %v1112_v49, %v1038_v53 }
 0x2fc   : > { %1199 = vadd.xlane.f32.xlu1 %v1198_v46  ;;  %v1204_v2 = vsel %vm951_vm10, %v1180_v50, 0.0  ;;  %v1184_v3 = vmul.f32 %v3845_v23, %v1161_v52  ;;  %v1159_v6 = vmax.f32 %v1143_v55, 0.0  ;;  %v1147_v7 = vadd.f32 %v1120_v56, %v1041_v58 }
 0x2fd   : > { %v1124_v8 = vrot.slane %v1094_v57, %v3837_v5  ;;  %v1096_v9 = vcombine.high %v1092_v43, %v1092_v43  ;;  %v1207_v11 = vsel %vm951_vm10, %v1181_v62, 0.0  ;;  %v1185_v12 = vmul.f32 %v3845_v23, %v1162_v63 }
 0x2fe   : > { %1196 = vadd.xlane.f32.xlu0 %v1195_v54  ;;  %v1160_v13 = vmax.f32 %v1144_v0, 0.0  ;;  %v1148_v14 = vadd.f32 %v1120_v56, %v1042_v4  ;;  %v1216_v15 = vsel %vm951_vm10, %v1184_v3, 0.0  ;;  %v1182_v17 = vmul.f32 %v3845_v23, %v1159_v6 }
 0x2ff   : > { %v1163_v18 = vmax.f32 %v1147_v7, 0.0  ;;  %v1149_v19 = vadd.f32 %v1124_v8, %v1043_v10  ;;  %v1128_v20 = vrot.slane %v1096_v9, %v3837_v5  ;;  %v1219_v22 = vsel %vm951_vm10, %v1185_v12, 0.0 }
 0x300   : > { %1202 = vadd.xlane.f32.xlu1 %v1201_v60  ;;  %v1183_v24 = vmul.f32 %v3845_v23, %v1160_v13  ;;  %v1164_v25 = vmax.f32 %v1148_v14, 0.0  ;;  %v1150_v26 = vadd.f32 %v1124_v8, %v1044_v16  ;;  %v1210_v28 = vsel %vm951_vm10, %v1182_v17, 0.0 }
 0x301   : > { %v1186_v29 = vmul.f32 %v3845_v23, %v1163_v18  ;;  %v1165_v30 = vmax.f32 %v1149_v19, 0.0  ;;  %v1151_v31 = vadd.f32 %v1128_v20, %v1045_v21  ;;  %v1152_v35 = vadd.f32 %v1128_v20, %v1046_v27 }
 0x302   : > { %1205 = vadd.xlane.f32.xlu0 %v1204_v2  ;;  %v1213_v32 = vsel %vm951_vm10, %v1183_v24, 0.0  ;;  %v1187_v33 = vmul.f32 %v3845_v23, %v1164_v25  ;;  %v1166_v34 = vmax.f32 %v1150_v26, 0.0  ;;  %v1283_v63 = vand.u32 127, %v1052_v59 }
 0x303   : > { %v1222_v36 = vsel %vm951_vm10, %v1186_v29, 0.0  ;;  %v1188_v37 = vmul.f32 %v3845_v23, %v1165_v30  ;;  %v1167_v38 = vmax.f32 %v1151_v31, 0.0  ;;  %v1168_v41 = vmax.f32 %v1152_v35, 0.0 }
 0x304   : > { %1208 = vadd.xlane.f32.xlu1 %v1207_v11  ;;  %v1225_v39 = vsel %vm951_vm10, %v1187_v33, 0.0  ;;  %v1189_v40 = vmul.f32 %v3845_v23, %v1166_v34  ;;  %v1288_v2 = vadd.s32 4294967288, %v1283_v63  ;;  %v3886_v6 = vsub.s32 %v1283_v63, %v3825_v61 }
 0x305   : > { %v1228_v42 = vsel %vm951_vm10, %v1188_v37, 0.0  ;;  %v1190_v43 = vmul.f32 %v3845_v23, %v1167_v38  ;;  %v1191_v45 = vmul.f32 %v3845_v23, %v1168_v41 }
 0x306   : > { %1217 = vadd.xlane.f32.xlu0 %v1216_v15  ;;  %v1231_v44 = vsel %vm951_vm10, %v1189_v40, 0.0  ;;  %v3889_v7 = vsub.s32 %v1288_v2, %v3825_v61  ;;  %v1396_v2 = vsub.s32 4, %v3825_v61 }
 0x307   : > { %v1234_v46 = vsel %vm951_vm10, %v1190_v43, 0.0  ;;  %v1237_v47 = vsel %vm951_vm10, %v1191_v45, 0.0 }
 0x308   : > { %1220 = vadd.xlane.f32.xlu1 %v1219_v22 }
 0x30a   : > { %1211 = vadd.xlane.f32.xlu0 %v1210_v28 }
 0x30c   : > { %1214 = vadd.xlane.f32.xlu1 %v1213_v32 }
 0x30e   : > { %1223 = vadd.xlane.f32.xlu0 %v1222_v36 }
 0x310   : > { %1226 = vadd.xlane.f32.xlu1 %v1225_v39 }
 0x312   : > { %1229 = vadd.xlane.f32.xlu0 %v1228_v42 }
 0x314   : > { %1232 = vadd.xlane.f32.xlu1 %v1231_v44 }
 0x316   : > { %1235 = vadd.xlane.f32.xlu0 %v1234_v46 }
 0x318   : > { %1238 = vadd.xlane.f32.xlu1 %v1237_v47 }
 0x32c   : > { %1247 = vperm.xlu0 %2967, %v2685_v48  }
 0x383   : > { %v1194_v49 = vpop.xlane.xlu0 %1193 }
 0x385   : > { %v1200_v50 = vpop.xlane.xlu1 %1199 }
 0x387   : > { %v1197_v52 = vpop.xlane.xlu0 %1196 }
 0x389   : > { %v1203_v53 = vpop.xlane.xlu1 %1202 }
 0x38b   : > { %v1206_v54 = vpop.xlane.xlu0 %1205 }
 0x38d   : > { %v1209_v55 = vpop.xlane.xlu1 %1208 }
 0x38f   : > { %v1218_v56 = vpop.xlane.xlu0 %1217 }
 0x391   : > { %v1221_v58 = vpop.xlane.xlu1 %1220 }
 0x393   : > { %v1212_v57 = vpop.xlane.xlu0 %1211 }
 0x395   : > { %v1215_v23 = vpop.xlane.xlu1 %1214 }
 0x397   : > { %v1224_v60 = vpop.xlane.xlu0 %1223 }
 0x399   : > { %v1227_v0 = vpop.xlane.xlu1 %1226 }
 0x39b   : > { %v1230_v62 = vpop.xlane.xlu0 %1229 }
 0x39d   : > { %v1233_v4 = vpop.xlane.xlu1 %1232 }
 0x39f   : > { %v1236_v3 = vpop.xlane.xlu0 %1235 }
 0x3a1   : > { %v1239_v22 = vpop.xlane.xlu1 %1238 }
 0x3a7   : > { %v1248_v8 = vpop.permute.xlu0 %1247 }
 0x3a8   : > { %v3891_v9 = vadd.f32 %v1248_v8, %v1194_v49  ;;  %v3893_v10 = vadd.f32 %v1248_v8, %v1197_v52  ;;  %v3895_v11 = vadd.f32 %v1248_v8, %v1200_v50  ;;  %v3897_v12 = vadd.f32 %v1248_v8, %v1203_v53 }
 0x3a9   : > { %v3899_v59 = vadd.f32 %v1248_v8, %v1206_v54  ;;  %v3901_v13 = vadd.f32 %v1248_v8, %v1209_v55  ;;  %v3903_v14 = vadd.f32 %v1248_v8, %v1212_v57  ;;  %v3905_v15 = vadd.f32 %v1248_v8, %v1215_v23 }
 0x3aa   : > { %v3907_v16 = vadd.f32 %v1248_v8, %v1218_v56  ;;  %v3909_v17 = vadd.f32 %v1248_v8, %v1221_v58  ;;  %v3911_v18 = vadd.f32 %v1248_v8, %v1224_v60  ;;  %v3913_v19 = vadd.f32 %v1248_v8, %v1227_v0 }
 0x3ab   : > { %v3915_v20 = vadd.f32 %v1248_v8, %v1230_v62  ;;  %v3917_v21 = vadd.f32 %v1248_v8, %v1233_v4  ;;  %v1287_v24 = vrot.slane %v3891_v9, %v3886_v6  ;;  %v1292_v25 = vrot.slane %v3893_v10, %v3889_v7 }
 0x3ac   : > { %v1298_v26 = vrot.slane %v3895_v11, %v3886_v6  ;;  %v1302_v27 = vrot.slane %v3897_v12, %v3889_v7  ;;  %v3927_v28 = vadd.f32 %v1248_v8, %v1236_v3  ;;  %v3929_v29 = vadd.f32 %v1248_v8, %v1239_v22 }
 0x3ad   : > { %v1307_v30 = vrot.slane %v3899_v59, %v3886_v6  ;;  %v1311_v31 = vrot.slane %v3901_v13, %v3889_v7  ;;  %v1294_v32 = vsel %vm1293_vm11, %v1292_v25, %v1287_v24  ;;  %v1316_v34 = vrot.slane %v3903_v14, %v3886_v6 }
 0x3ae   : > { %v1303_v33 = vsel %vm1293_vm11, %v1302_v27, %v1298_v26  ;;  %v1320_v35 = vrot.slane %v3905_v15, %v3889_v7  ;;  %v1325_v37 = vrot.slane %v3907_v16, %v3886_v6  ;;  %v1329_v38 = vrot.slane %v3909_v17, %v3889_v7 }
 0x3af   : > { %v1312_v36 = vsel %vm1293_vm11, %v1311_v31, %v1307_v30  ;;  %v1334_v39 = vrot.slane %v3911_v18, %v3886_v6  ;;  %v1338_v40 = vrot.slane %v3913_v19, %v3889_v7  ;;  %v1343_v41 = vrot.slane %v3915_v20, %v3886_v6 }
 0x3b0   : > { %v1347_v42 = vrot.slane %v3917_v21, %v3889_v7  ;;  %v1359_v43 = vsel %vm1358_vm12, %v1303_v33, %v1294_v32  ;;  %v1321_v44 = vsel %vm1293_vm11, %v1320_v35, %v1316_v34  ;;  %v1352_v45 = vrot.slane %v3927_v28, %v3886_v6 }
 0x3b1   : > { %v1356_v46 = vrot.slane %v3929_v29, %v3889_v7  ;;  %v1361_v47 = vsel %vm1360_vm13, %v1312_v36, %v1359_v43  ;;  %v1330_v48 = vsel %vm1293_vm11, %v1329_v38, %v1325_v37  ;;  %v1339_v50 = vsel %vm1293_vm11, %v1338_v40, %v1334_v39 }
 0x3b2   : > { %v1363_v49 = vsel %vm1362_vm14, %v1321_v44, %v1361_v47  ;;  %v1348_v53 = vsel %vm1293_vm11, %v1347_v42, %v1343_v41  ;;  %v1392_v60 = vsub.s32 3, %v3825_v61  ;;  %v1384_v62 = vsub.s32 1, %v3825_v61 }
 0x3b3   : > { %v1365_v52 = vsel %vm1364_vm15, %v1330_v48, %v1363_v49  ;;  %v1357_v55 = vsel %vm1293_vm11, %v1356_v46, %v1352_v45  ;;  %v1400_v24 = vsub.s32 5, %v3825_v61  ;;  %v1404_v31 = vsub.s32 6, %v3825_v61 }
 0x3b4   : > { %v1367_v54 = vsel %vm1366_vm0, %v1339_v50, %v1365_v52  ;;  %v1408_v36 = vsub.s32 7, %v3825_v61 }
 0x3b5   : > { %v1369_v56 = vsel %vm1368_vm1, %v1348_v53, %v1367_v54 }
 0x3b6   : > { %v1371_v57 = vsel %vm1370_vm2, %v1357_v55, %v1369_v56 }
 0x3b7   : > { %v1374_v58 = vsel %vm1373_vm3, %v1371_v57, -inf }
 0x3b8   : > { %1375 = vmax.xlane.f32.xlu1 %v1374_v58 }
 0x441   : > { %v1376_v23 = vpop.xlane.xlu1 %1375 }
 0x442   : > { %v1381_v63 = vrot.slane %v1376_v23, %v3837_v5  ;;  %v1393_v3 = vrot.slane %v1376_v23, %v1392_v60  ;;  %v1385_v4 = vrot.slane %v1376_v23, %v1384_v62  ;;  %v1397_v25 = vrot.slane %v1376_v23, %v1396_v2 }
 0x443   : > { %v1401_v32 = vrot.slane %v1376_v23, %v1400_v24  ;;  %v1409_v40 = vrot.slane %v1376_v23, %v1408_v36 }
 0x444   : > { %v1418_v0 = vsub.f32 %v3891_v9, %v1381_v63  ;;  %v1419_v8 = vsub.f32 %v3893_v10, %v1381_v63  ;;  %v1425_v26 = vsub.f32 %v3905_v15, %v1393_v3  ;;  %v1388_v9 = vsub.s32 2, %v3825_v61 }
 0x445   : > { %v1420_v27 = vsub.f32 %v3895_v11, %v1385_v4  ;;  %v1427_v10 = vsub.f32 %v3909_v17, %v1397_v25  ;;  %v1421_v35 = vsub.f32 %v3897_v12, %v1385_v4  ;;  %v1405_v11 = vrot.slane %v1376_v23, %v1404_v31 }
 0x446   : > { %v1434_v22 = vmul.f32 1.442695, %v1418_v0  ;;  %v1436_v30 = vmul.f32 1.442695, %v1419_v8  ;;  %v1448_v33 = vmul.f32 1.442695, %v1425_v26  ;;  %v1389_v34 = vrot.slane %v1376_v23, %v1388_v9 }
 0x447   : > { %v1438_v15 = vmul.f32 1.442695, %v1420_v27  ;;  %v1429_v37 = vsub.f32 %v3913_v19, %v1401_v32  ;;  %v1452_v38 = vmul.f32 1.442695, %v1427_v10  ;;  %v1440_v17 = vmul.f32 1.442695, %v1421_v35 }
 0x448   : > { %2969 = vpow2.f32 %v1434_v22  ;;  %v1422_v39 = vsub.f32 %v3899_v59, %v1389_v34  ;;  %v1431_v12 = vsub.f32 %v3917_v21, %v1405_v11  ;;  %v1423_v42 = vsub.f32 %v3901_v13, %v1389_v34 }
 0x449   : > { %2971 = vpow2.f32 %v1436_v30  ;;  %v1456_v41 = vmul.f32 1.442695, %v1429_v37  ;;  %v1433_v19 = vsub.f32 %v3929_v29, %v1409_v40  ;;  %v1424_v45 = vsub.f32 %v3903_v14, %v1393_v3 }
 0x44a   : > { %2973 = vpow2.f32 %v1448_v33  ;;  %v1442_v43 = vmul.f32 1.442695, %v1422_v39  ;;  %v1460_v59 = vmul.f32 1.442695, %v1431_v12  ;;  %v1444_v46 = vmul.f32 1.442695, %v1423_v42 }
 0x44b   : > { %2975 = vpow2.f32 %v1438_v15  ;;  %v1464_v13 = vmul.f32 1.442695, %v1433_v19  ;;  %v1426_v48 = vsub.f32 %v3907_v16, %v1397_v25  ;;  %v1446_v49 = vmul.f32 1.442695, %v1424_v45 }
 0x44c   : > { %2977 = vpow2.f32 %v1452_v38  ;;  %v1428_v29 = vsub.f32 %v3911_v18, %v1401_v32  ;;  %v1430_v54 = vsub.f32 %v3915_v20, %v1405_v11  ;;  %v1432_v57 = vsub.f32 %v3927_v28, %v1409_v40 }
 0x44d   : > { %2979 = vpow2.f32 %v1440_v17  ;;  %v1450_v52 = vmul.f32 1.442695, %v1426_v48 }
 0x44e   : > { %2981 = vpow2.f32 %v1456_v41  ;;  %v1454_v55 = vmul.f32 1.442695, %v1428_v29  ;;  %v1458_v58 = vmul.f32 1.442695, %v1430_v54  ;;  %v1462_v63 = vmul.f32 1.442695, %v1432_v57 }
 0x44f   : > { %2983 = vpow2.f32 %v1442_v43 }
 0x450   : > { %2985 = vpow2.f32 %v1460_v59 }
 0x451   : > { %2987 = vpow2.f32 %v1444_v46 }
 0x452   : > { %2989 = vpow2.f32 %v1464_v13 }
 0x453   : > { %2991 = vpow2.f32 %v1446_v49 }
 0x454   : > { %2993 = vpow2.f32 %v1450_v52 }
 0x455   : > { %v4003_v44 = vpop.eup %2969  ;;  %2995 = vpow2.f32 %v1454_v55 }
 0x456   : > { %1483 = vperm.xlu1 %2968, %v4003_v44   ;;  %v4008_v47 = vpop.eup %2971  ;;  %2997 = vpow2.f32 %v1458_v58 }
 0x457   : > { %v4011_v21 = vpop.eup %2973  ;;  %2999 = vpow2.f32 %v1462_v63 }
 0x458   : > { %v4014_v50 = vpop.eup %2975  ;;  %1504 = vperm.xlu0 %2967, %v4011_v21  }
 0x459   : > { %v4018_v14 = vpop.eup %2977 }
 0x45a   : > { %1486 = vperm.xlu1 %2968, %v4008_v47   ;;  %v4021_v53 = vpop.eup %2979 }
 0x45b   : > { %v4025_v16 = vpop.eup %2981 }
 0x45c   : > { %1510 = vperm.xlu0 %2967, %v4018_v14   ;;  %v4028_v56 = vpop.eup %2983 }
 0x45d   : > { %v4032_v18 = vpop.eup %2985 }
 0x45e   : > { %1489 = vperm.xlu1 %2968, %v4014_v50   ;;  %v4035_v23 = vpop.eup %2987 }
 0x45f   : > { %v4039_v20 = vpop.eup %2989 }
 0x460   : > { %1516 = vperm.xlu0 %2967, %v4025_v16   ;;  %v4041_v0 = vpop.eup %2991 }
 0x461   : > { %v4045_v28 = vpop.eup %2993 }
 0x462   : > { %1492 = vperm.xlu1 %2968, %v4021_v53   ;;  %v4048_v3 = vpop.eup %2995 }
 0x463   : > { %v4051_v4 = vpop.eup %2997 }
 0x464   : > { %1522 = vperm.xlu0 %2967, %v4032_v18   ;;  %v4054_v8 = vpop.eup %2999 }
 0x466   : > { %1495 = vperm.xlu1 %2968, %v4028_v56  }
 0x468   : > { %1528 = vperm.xlu0 %2967, %v4039_v20  }
 0x46a   : > { %1498 = vperm.xlu1 %2968, %v4035_v23  }
 0x46e   : > { %1501 = vperm.xlu1 %2968, %v4041_v0  }
 0x472   : > { %1507 = vperm.xlu1 %2968, %v4045_v28  }
 0x476   : > { %1513 = vperm.xlu1 %2968, %v4048_v3  }
 0x47a   : > { %1519 = vperm.xlu1 %2968, %v4051_v4  }
 0x47e   : > { %1525 = vperm.xlu1 %2968, %v4054_v8  }
 0x4d1   : > { %v1484_v22 = vpop.permute.xlu1 %1483 }
 0x4d2   : > { %v1533_v19 = vrot.slane %v1484_v22, %v3886_v6 }
 0x4d3   : > { %v1505_v30 = vpop.permute.xlu0 %1504 }
 0x4d4   : > { %v1564_v43 = vrot.slane %v1505_v30, %v3889_v7 }
 0x4d5   : > { %v1487_v25 = vpop.permute.xlu1 %1486 }
 0x4d6   : > { %v1537_v17 = vrot.slane %v1487_v25, %v3889_v7 }
 0x4d7   : > { %v1511_v10 = vpop.permute.xlu0 %1510 }
 0x4d8   : > { %v1573_v46 = vrot.slane %v1511_v10, %v3889_v7  ;;  %v1538_v49 = vsel %vm1293_vm11, %v1537_v17, %v1533_v19 }
 0x4d9   : > { %v1490_v26 = vpop.permute.xlu1 %1489 }
 0x4da   : > { %v1542_v40 = vrot.slane %v1490_v26, %v3886_v6 }
 0x4db   : > { %v1517_v35 = vpop.permute.xlu0 %1516 }
 0x4dc   : > { %v1582_v29 = vrot.slane %v1517_v35, %v3889_v7 }
 0x4dd   : > { %v1493_v27 = vpop.permute.xlu1 %1492 }
 0x4de   : > { %v1546_v11 = vrot.slane %v1493_v27, %v3889_v7 }
 0x4df   : > { %v1523_v37 = vpop.permute.xlu0 %1522 }
 0x4e0   : > { %v1547_v59 = vsel %vm1293_vm11, %v1546_v11, %v1542_v40  ;;  %v1591_v55 = vrot.slane %v1523_v37, %v3889_v7 }
 0x4e1   : > { %v1496_v32 = vpop.permute.xlu1 %1495  ;;  %v1602_v57 = vsel %vm1358_vm12, %v1547_v59, %v1538_v49 }
 0x4e2   : > { %v1551_v41 = vrot.slane %v1496_v32, %v3886_v6 }
 0x4e3   : > { %v1529_v58 = vpop.permute.xlu0 %1528 }
 0x4e4   : > { %v1600_v32 = vrot.slane %v1529_v58, %v3889_v7 }
 0x4e5   : > { %v1499_v33 = vpop.permute.xlu1 %1498 }
 0x4e6   : > { %v1555_v38 = vrot.slane %v1499_v33, %v3889_v7 }
 0x4e8   : > { %v1556_v13 = vsel %vm1293_vm11, %v1555_v38, %v1551_v41 }
 0x4e9   : > { %v1502_v34 = vpop.permute.xlu1 %1501  ;;  %v1603_v22 = vsel %vm1360_vm13, %v1556_v13, %v1602_v57  ;;  %v924_v57 = vld [vmem:[#allocation5 + $0x10] sm:$0xff] }
 0x4ea   : > { %v1560_v12 = vrot.slane %v1502_v34, %v3886_v6 }
 0x4ec   : > { %v1565_v52 = vsel %vm1293_vm11, %v1564_v43, %v1560_v12 }
 0x4ed   : > { %v1508_v15 = vpop.permute.xlu1 %1507  ;;  %v1604_v26 = vsel %vm1362_vm14, %v1565_v52, %v1603_v22  ;;  %v923_v52 = vld [vmem:[#allocation5 + $0x8] sm:$0xff] }
 0x4ee   : > { %v1569_v42 = vrot.slane %v1508_v15, %v3886_v6 }
 0x4f0   : > { %v1574_v63 = vsel %vm1293_vm11, %v1573_v46, %v1569_v42 }
 0x4f1   : > { %v1514_v39 = vpop.permute.xlu1 %1513  ;;  %v1605_v10 = vsel %vm1364_vm15, %v1574_v63, %v1604_v26 }
 0x4f2   : > { %v1578_v45 = vrot.slane %v1514_v39, %v3886_v6 }
 0x4f4   : > { %v1583_v25 = vsel %vm1293_vm11, %v1582_v29, %v1578_v45 }
 0x4f5   : > { %v1520_v48 = vpop.permute.xlu1 %1519  ;;  %v1606_v34 = vsel %vm1366_vm0, %v1583_v25, %v1605_v10  ;;  %v927_v25 = vld [vmem:[#allocation5 + $0x28] sm:$0xff]  ;;  %v929_v10 = vld [vmem:[#allocation5 + $0x38] sm:$0xff] }
 0x4f6   : > { %v1587_v54 = vrot.slane %v1520_v48, %v3886_v6 }
 0x4f8   : > { %v1592_v27 = vsel %vm1293_vm11, %v1591_v55, %v1587_v54  ;;  %v925_v55 = vld [vmem:[#allocation5 + $0x18] sm:$0xff] }
 0x4f9   : > { %v1526_v30 = vpop.permute.xlu1 %1525  ;;  %v1607_v15 = vsel %vm1368_vm1, %v1592_v27, %v1606_v34 }
 0x4fa   : > { %v1596_v33 = vrot.slane %v1526_v30, %v3886_v6  ;;  %v926_v30 = vld [vmem:[#allocation5 + $0x20] sm:$0xff] }
 0x4fc   : > { %v1601_v35 = vsel %vm1293_vm11, %v1600_v32, %v1596_v33 }
 0x4fd   : > { %v1608_v11 = vsel %vm1370_vm2, %v1601_v35, %v1607_v15 }
 0x4fe   : > { %v1610_v37 = vsel %vm1373_vm3, %v1608_v11, 0.0  ;;  %v928_v11 = vld [vmem:[#allocation5 + $0x30] sm:$0xff] }
 0x4ff   : > { %1611 = vadd.xlane.f32.xlu1 %v1610_v37  ;;  %v930_v37 = vld [vmem:[#allocation5 + $0x40] sm:$0xff] }
 0x588   : > { %v1612_v38 = vpop.xlane.xlu1 %1611 }
 0x589   : > { %v1633_v39 = vrot.slane %v1612_v38, %v1396_v2  ;;  %v1617_v17 = vrot.slane %v1612_v38, %v3837_v5  ;;  %v1645_v40 = vrot.slane %v1612_v38, %v1408_v36  ;;  %v1621_v12 = vrot.slane %v1612_v38, %v1384_v62 }
 0x58a   : > { %v1625_v41 = vrot.slane %v1612_v38, %v1388_v9  ;;  %v1629_v62 = vrot.slane %v1612_v38, %v1392_v60 }
 0x58b   : > { %3001 = vrcp.f32 %v1633_v39 }
 0x58c   : > { %3003 = vrcp.f32 %v1617_v17 }
 0x58d   : > { %3005 = vrcp.f32 %v1645_v40 }
 0x58e   : > { %3007 = vrcp.f32 %v1621_v12 }
 0x58f   : > { %3009 = vrcp.f32 %v1625_v41 }
 0x590   : > { %3011 = vrcp.f32 %v1629_v62 }
 0x598   : > { %v3002_v42 = vpop.eup %3001 }
 0x599   : > { %v3004_v43 = vpop.eup %3003  ;;  %v1668_v19 = vmul.f32 %v3002_v42, %v4018_v14 }
 0x59a   : > { %v3006_v2 = vpop.eup %3005  ;;  %v1655_v5 = vmul.f32 %v3004_v43, %v4003_v44  ;;  %v1656_v59 = vmul.f32 %v3004_v43, %v4008_v47 }
 0x59b   : > { %1725 = vperm.xlu1 %2968, %v1668_v19   ;;  %v1676_v36 = vmul.f32 %v3006_v2, %v4054_v8  ;;  %v3008_v45 = vpop.eup %3007  ;;  %v1637_v8 = vrot.slane %v1612_v38, %v1400_v24 }
 0x59c   : > { %1680 = vperm.xlu0 %2967, %v1655_v5   ;;  %v1658_v9 = vmul.f32 %v3008_v45, %v4014_v50  ;;  %v1659_v14 = vmul.f32 %v3008_v45, %v4021_v53  ;;  %v3010_v44 = vpop.eup %3009  ;;  %v1641_v50 = vrot.slane %v1612_v38, %v1404_v31  ;;  %v1677_v31 = vmul.f32 %v3006_v2, %v4039_v20  ;;  %v931_v38 = vld [vmem:[#allocation5 + $0x48] sm:$0xff] }
 0x59d   : > { %v1661_v46 = vmul.f32 %v3010_v44, %v4028_v56  ;;  %v1662_v47 = vmul.f32 %v3010_v44, %v4035_v23  ;;  %3013 = vrcp.f32 %v1637_v8  ;;  %v3012_v60 = vpop.eup %3011  ;;  %v1667_v56 = vmul.f32 %v3002_v42, %v4045_v28  ;;  %v932_v8 = vld [vmem:[#allocation5 + $0x50] sm:$0xff] }
 0x59e   : > { %v1664_v13 = vmul.f32 %v3012_v60, %v4041_v0  ;;  %v1665_v53 = vmul.f32 %v3012_v60, %v4011_v21  ;;  %3015 = vrcp.f32 %v1641_v50 }
 0x59f   : > { %1750 = vperm.xlu1 %2968, %v1676_v36  }
 0x5a0   : > { %1685 = vperm.xlu0 %2967, %v1656_v59   ;;  %v936_v59 = vld [vmem:[#allocation5 + $0x70] sm:$0xff] }
 0x5a4   : > { %1690 = vperm.xlu0 %2967, %v1658_v9  }
 0x5a8   : > { %1695 = vperm.xlu0 %2967, %v1659_v14  }
 0x5aa   : > { %v3014_v48 = vpop.eup %3013 }
 0x5ab   : > { %v1670_v24 = vmul.f32 %v3014_v48, %v4048_v3  ;;  %v1671_v23 = vmul.f32 %v3014_v48, %v4025_v16  ;;  %v3016_v49 = vpop.eup %3015 }
 0x5ac   : > { %1700 = vperm.xlu0 %2967, %v1661_v46   ;;  %v1673_v0 = vmul.f32 %v3016_v49, %v4051_v4  ;;  %v1674_v61 = vmul.f32 %v3016_v49, %v4032_v18  ;;  %v922_v4 = vld [vmem:[#allocation5] sm:$0xff] }
 0x5b0   : > { %1705 = vperm.xlu0 %2967, %v1662_v47  }
 0x5b4   : > { %1710 = vperm.xlu0 %2967, %v1664_v13  }
 0x5b8   : > { %1715 = vperm.xlu0 %2967, %v1665_v53  }
 0x5bc   : > { %1720 = vperm.xlu0 %2967, %v1667_v56   ;;  %v933_v56 = vld [vmem:[#allocation5 + $0x58] sm:$0xff] }
 0x5c0   : > { %1730 = vperm.xlu0 %2967, %v1670_v24  }
 0x5c4   : > { %1735 = vperm.xlu0 %2967, %v1671_v23  }
 0x5c8   : > { %1740 = vperm.xlu0 %2967, %v1673_v0  }
 0x5cc   : > { %1745 = vperm.xlu0 %2967, %v1674_v61  }
 0x5d0   : > { %1755 = vperm.xlu0 %2967, %v1677_v31  }
 0x616   : > { %v4142_v33 = vpop.permute.xlu1 %1725 }
 0x617   : > { %v4120_v21 = vpop.permute.xlu0 %1680  ;;  %v1767_v5 = vmul.f32 %v4142_v33, %v931_v38  ;;  %v2394_v23 = vrot.slane %v4142_v33, %v3889_v7 }
 0x618   : > { %v1758_v20 = vmul.f32 %v4120_v21, %v922_v4  ;;  %v2354_v49 = vrot.slane %v4120_v21, %v3886_v6 }
 0x619   : > { %v1811_v13 = vsel %vm951_vm10, %v1767_v5, 0.0 }
 0x61a   : > { %v1774_v27 = vsel %vm951_vm10, %v1758_v20, 0.0  ;;  %v4155_v36 = vpop.permute.xlu1 %1750 }
 0x61b   : > { %v4122_v28 = vpop.permute.xlu0 %1685  ;;  %v1772_v50 = vmul.f32 %v4155_v36, %v936_v59 }
 0x61c   : > { %v1759_v18 = vmul.f32 %v4122_v28, %v923_v52  ;;  %v2358_v4 = vrot.slane %v4122_v28, %v3889_v7 }
 0x61d   : > { %v4175_v20 = vsel %vm951_vm10, %v1772_v50, 0.0 }
 0x61e   : > { %v1775_v22 = vsel %vm951_vm10, %v1759_v18, 0.0 }
 0x61f   : > { %v4124_v29 = vpop.permute.xlu0 %1690  ;;  %v1776_v34 = vadd.f32 %v1775_v22, %v1774_v27 }
 0x620   : > { %v1760_v26 = vmul.f32 %v4124_v29, %v924_v57  ;;  %v2417_v57 = vrot.slane %v4155_v36, %v3886_v6  ;;  %v2363_v22 = vrot.slane %v4124_v29, %v3886_v6 }
 0x621   : > { %v1777_v42 = vrot.slane %v1776_v34, 4 }
 0x622   : > { %v1783_v39 = vsel %vm951_vm10, %v1760_v26, 0.0 }
 0x623   : > { %v4126_v3 = vpop.permute.xlu0 %1695  ;;  %v1778_v47 = vadd.f32 %v1777_v42, %v1776_v34  ;;  %v934_v34 = vld [vmem:[#allocation5 + $0x60] sm:$0xff] }
 0x624   : > { %v1761_v63 = vmul.f32 %v4126_v3, %v925_v55  ;;  %v2367_v18 = vrot.slane %v4126_v3, %v3889_v7 }
 0x625   : > { %v1779_v52 = vrot.slane %v1778_v47, 2 }
 0x626   : > { %v1784_v35 = vsel %vm951_vm10, %v1761_v63, 0.0 }
 0x627   : > { %v4128_v16 = vpop.permute.xlu0 %1700  ;;  %v1785_v12 = vadd.f32 %v1784_v35, %v1783_v39  ;;  %v4187_v35 = vadd.f32 %v1779_v52, %v1778_v47  ;;  %v935_v39 = vld [vmem:[#allocation5 + $0x68] sm:$0xff] }
 0x628   : > { %v1762_v17 = vmul.f32 %v4128_v16, %v926_v30  ;;  %v2372_v27 = vrot.slane %v4128_v16, %v3886_v6 }
 0x629   : > { %v1786_v9 = vrot.slane %v1785_v12, 4 }
 0x62a   : > { %v1792_v62 = vsel %vm951_vm10, %v1762_v17, 0.0 }
 0x62b   : > { %v4130_v54 = vpop.permute.xlu0 %1705  ;;  %v1787_v0 = vadd.f32 %v1786_v9, %v1785_v12 }
 0x62c   : > { %v1763_v15 = vmul.f32 %v4130_v54, %v927_v25  ;;  %v2376_v21 = vrot.slane %v4130_v54, %v3889_v7  ;;  %v2359_v54 = vsel %vm1293_vm11, %v2358_v4, %v2354_v49 }
 0x62d   : > { %v1788_v3 = vrot.slane %v1787_v0, 2 }
 0x62e   : > { %v1793_v43 = vsel %vm951_vm10, %v1763_v15, 0.0  ;;  %v2368_v15 = vsel %vm1293_vm11, %v2367_v18, %v2363_v22 }
 0x62f   : > { %v4134_v58 = vpop.permute.xlu0 %1710  ;;  %v1794_v14 = vadd.f32 %v1793_v43, %v1792_v62  ;;  %v1789_v43 = vadd.f32 %v1788_v3, %v1787_v0 }
 0x630   : > { %v1764_v19 = vmul.f32 %v4134_v58, %v928_v11  ;;  %v2377_v11 = vsel %vm1293_vm11, %v2376_v21, %v2372_v27  ;;  %v2381_v17 = vrot.slane %v4134_v58, %v3886_v6 }
 0x631   : > { %v1795_v61 = vrot.slane %v1794_v14, 4  ;;  %v1790_v0 = vrot.slane %v1789_v43, 1 }
 0x632   : > { %v1801_v60 = vsel %vm951_vm10, %v1764_v19, 0.0  ;;  %v2423_v19 = vsel %vm1358_vm12, %v2368_v15, %v2359_v54  ;;  %v1873_v15 = vld [vmem:[#allocation15 + $0x18] sm:$0xff] }
 0x633   : > { %v4140_v32 = vpop.permute.xlu0 %1715  ;;  %v1796_v30 = vadd.f32 %v1795_v61, %v1794_v14  ;;  %v2424_v58 = vsel %vm1360_vm13, %v2377_v11, %v2423_v19  ;;  %v1872_v11 = vld [vmem:[#allocation15 + $0x10] sm:$0xff]  ;;  %2759 = vmatpush3.msra.mxu1 %v1873_v15  ;;  %v2151_v15 = vld [vmem:[#allocation18 + $0x18] sm:$0xff] }
 0x634   : > { %v1765_v40 = vmul.f32 %v4140_v32, %v929_v10  ;;  %v2385_v29 = vrot.slane %v4140_v32, %v3889_v7  ;;  %2760 = vmatprep.subr.mxu1 %v3434_v51 }
 0x635   : > { %2761 = vmatpush3.msra.mxu1 %v1872_v11  ;;  %v2154_v11 = vld [vmem:[#allocation20 + $0x8] sm:$0xff] }
 0x636   : > { %v1802_v45 = vsel %vm951_vm10, %v1765_v40, 0.0  ;;  %v2386_v36 = vsel %vm1293_vm11, %v2385_v29, %v2381_v17  ;;  %v1869_v29 = vld [vmem:[#allocation14 + $0x18] sm:$0xff]  ;;  %2762 = vmatprep.subr.mxu1 %v3434_v51 }
 0x637   : > { %v4149_v41 = vpop.permute.xlu0 %1720  ;;  %v1803_v53 = vadd.f32 %v1802_v45, %v1801_v60  ;;  %2770 = vmatpush3.msra.mxu0 %v1869_v29  ;;  %v2150_v29 = vld [vmem:[#allocation18 + $0x10] sm:$0xff] }
 0x638   : > { %v1766_v2 = vmul.f32 %v4149_v41, %v930_v37  ;;  %v2390_v38 = vrot.slane %v4149_v41, %v3886_v6  ;;  %2771 = vmatprep.subr.mxu0 %v3434_v51 }
 0x639   : > { %v1804_v63 = vrot.slane %v1803_v53, 4 }
 0x63a   : > { %v1810_v44 = vsel %vm951_vm10, %v1766_v2, 0.0  ;;  %v1797_v2 = vrot.slane %v1796_v30, 2  ;;  %v2395_v9 = vsel %vm1293_vm11, %v2394_v23, %v2390_v38 }
 0x63b   : > { %v4160_v46 = vpop.permute.xlu0 %1730  ;;  %v1812_v48 = vadd.f32 %v1811_v13, %v1810_v44  ;;  %v1805_v37 = vadd.f32 %v1804_v63, %v1803_v53  ;;  %v937_v44 = vld [vmem:[#allocation5 + $0x78] sm:$0xff] }
 0x63c   : > { %v1768_v24 = vmul.f32 %v4160_v46, %v932_v8  ;;  %v2399_v41 = vrot.slane %v4160_v46, %v3886_v6  ;;  %v2425_v46 = vsel %vm1362_vm14, %v2386_v36, %v2424_v58 }
 0x63d   : > { %v1813_v25 = vrot.slane %v1812_v48, 4  ;;  %v1806_v45 = vrot.slane %v1805_v37, 2  ;;  %v2426_v23 = vsel %vm1364_vm15, %v2395_v9, %v2425_v46 }
 0x63e   : > { %v1819_v28 = vsel %vm951_vm10, %v1768_v24, 0.0  ;;  %v1798_v24 = vadd.f32 %v1797_v2, %v1796_v30 }
 0x63f   : > { %v1736_v31 = vpop.permute.xlu0 %1735  ;;  %v1814_v40 = vadd.f32 %v1813_v25, %v1812_v48  ;;  %v1807_v61 = vadd.f32 %v1806_v45, %v1805_v37  ;;  %v1868_v37 = vld [vmem:[#allocation14 + $0x10] sm:$0xff] }
 0x640   : > { %v1769_v55 = vmul.f32 %v1736_v31, %v933_v56  ;;  %v2403_v12 = vrot.slane %v1736_v31, %v3889_v7  ;;  %2772 = vmatpush3.msra.mxu0 %v1868_v37  ;;  %v2153_v37 = vld [vmem:[#allocation20] sm:$0xff] }
 0x641   : > { %v1815_v8 = vrot.slane %v1814_v40, 2  ;;  %v1808_v3 = vrot.slane %v1807_v61, 1  ;;  %2773 = vmatprep.subr.mxu0 %v3434_v51 }
 0x642   : > { %v1820_v26 = vsel %vm951_vm10, %v1769_v55, 0.0  ;;  %v2404_v47 = vsel %vm1293_vm11, %v2403_v12, %v2399_v41  ;;  %v1867_v12 = vld [vmem:[#allocation14 + $0x8] sm:$0xff] }
 0x643   : > { %v1821_v10 = vadd.f32 %v1820_v26, %v1819_v28  ;;  %v1741_v33 = vpop.permute.xlu0 %1740  ;;  %v2427_v31 = vsel %vm1366_vm0, %v2404_v47, %v2426_v23  ;;  %v1816_v4 = vadd.f32 %v1815_v8, %v1814_v40  ;;  %v1799_v26 = vrot.slane %v1798_v24, 1  ;;  %v1871_v40 = vld [vmem:[#allocation15 + $0x8] sm:$0xff]  ;;  %2774 = vmatpush3.msra.mxu0 %v1867_v12  ;;  %v2023_v23 = vld [vmem:[#allocation17] sm:$0xff] }
 0x644   : > { %v1770_v42 = vmul.f32 %v1741_v33, %v934_v34  ;;  %v2408_v14 = vrot.slane %v1741_v33, %v3886_v6  ;;  %v1791_v33 = vadd.f32 %v1790_v0, %v1789_v43  ;;  %2763 = vmatpush3.msra.mxu1 %v1871_v40  ;;  %2775 = vmatprep.subr.mxu0 %v3434_v51  ;;  %v2318_v12 = vld [vmem:[#allocation3 + $0x8] sm:$0xff] }
 0x645   : > { %v1822_v16 = vrot.slane %v1821_v10, 4  ;;  %2764 = vmatprep.subr.mxu1 %v3434_v51 }
 0x646   : > { %v1828_v60 = vsel %vm951_vm10, %v1770_v42, 0.0 }
 0x647   : > { %v1823_v32 = vadd.f32 %v1822_v16, %v1821_v10  ;;  %v1746_v5 = vpop.permute.xlu0 %1745  ;;  %v1817_v10 = vrot.slane %v1816_v4, 1  ;;  %v1809_v16 = vadd.f32 %v1808_v3, %v1807_v61 }
 0x648   : > { %v1771_v59 = vmul.f32 %v1746_v5, %v935_v39  ;;  %v2412_v62 = vrot.slane %v1746_v5, %v3889_v7 }
 0x649   : > { %v1824_v50 = vrot.slane %v1823_v32, 2  ;;  %v1818_v42 = vadd.f32 %v1817_v10, %v1816_v4 }
 0x64a   : > { %v1829_v13 = vsel %vm951_vm10, %v1771_v59, 0.0  ;;  %v2413_v56 = vsel %vm1293_vm11, %v2412_v62, %v2408_v14 }
 0x64b   : > { %v1830_v53 = vadd.f32 %v1829_v13, %v1828_v60  ;;  %v1756_v48 = vpop.permute.xlu0 %1755  ;;  %v2428_v21 = vsel %vm1368_vm1, %v2413_v56, %v2427_v31  ;;  %v1825_v63 = vadd.f32 %v1824_v50, %v1823_v32  ;;  %v1866_v32 = vld [vmem:[#allocation14] sm:$0xff]  ;;  %v1865_v60 = vld [vmem:[%s621_s13] sm:$0xff]  ;;  %s3440_s13 = smov 64  }
 0x64c   : > { %v1773_v6 = vmul.f32 %v1756_v48, %v937_v44  ;;  %v2421_v49 = vrot.slane %v1756_v48, %v3889_v7  ;;  %v1781_v7 = vrot.slane %v4187_v35, 1  ;;  %2776 = vmatpush3.msra.mxu0 %v1866_v32  ;;  %v2683_v44 = vmul.f32 -1.442695, %v3831_v1  ;;  %v2026_v1 = vld [vmem:[#allocation17 + $0x18] sm:$0xff]  ;;  %v2025_v48 = vld [vmem:[#allocation17 + $0x10] sm:$0xff] }
 0x64d   : > { %v1831_v52 = vrot.slane %v1830_v53, 4  ;;  %2791 = vmatprep.subr.mxu0 %v3434_v51  ;;  %2778 = vmatmul.mubr.msk.f32.vlgmr.msra.gmra.mxu0 %vm951_vm10, %v1865_v60 }
 0x64e   : > { %v1838_v18 = vsel %vm951_vm10, %v1773_v6, 0.0  ;;  %v2422_v55 = vsel %vm1293_vm11, %v2421_v49, %v2417_v57  ;;  %v1826_v57 = vrot.slane %v1825_v63, 1  ;;  %v1782_v38 = vadd.f32 %v1781_v7, %v4187_v35  ;;  %v1870_v35 = vld [vmem:[#allocation15] sm:$0xff]  ;;  %2799 = vmatprep.mubr.msk.f32.mxu0 %vm3435_vm9, %v3434_v51  ;;  %v2022_v6 = vld [vmem:[#allocation2] sm:$0xff] }
 0x64f   : > { %v1832_v22 = vadd.f32 %v1831_v52, %v1830_v53  ;;  %v1839_v25 = vadd.f32 %v1838_v18, %v4175_v20  ;;  %v2429_v28 = vsel %vm1370_vm2, %v2422_v55, %v2428_v21  ;;  %v1800_v20 = vadd.f32 %v1799_v26, %v1798_v24  ;;  %2765 = vmatpush3.msra.mxu1 %v1870_v35  ;;  %v2116_v53 = vld [vmem:[#allocation3] sm:$0xff]  ;;  %v2024_v24 = vld [vmem:[#allocation17 + $0x8] sm:$0xff] }
 0x650   : > { %2431 = vst.msk [vmem:[%s704_s18] sm:$0xff] %vm1373_vm3, %v2429_v28  ;;  %v1827_v43 = vadd.f32 %v1826_v57, %v1825_v63  ;;  %v1854_v2 = vsel %vm1358_vm12, %v1791_v33, %v1782_v38  ;;  %2780 = vmatprep.subr.mxu1 %v3434_v51  ;;  %3017 = vpow2.f32 %v2683_v44  ;;  %v2689_v18 = vld [vmem:[%s4373_s12] ss:$0 sm:$0xff]  ;;  %v2148_v38 = vld [vmem:[#allocation18] sm:$0xff] }
 0x651   : > { %v1833_v27 = vrot.slane %v1832_v22, 2  ;;  %v1840_v30 = vrot.slane %v1839_v25, 4  ;;  %v1855_v36 = vsel %vm1360_vm13, %v1800_v20, %v1854_v2  ;;  %v2149_v20 = vld [vmem:[#allocation18 + $0x8] sm:$0xff] }
 0x652   : > { %v1856_v59 = vsel %vm1362_vm14, %v1809_v16, %v1855_v36  ;;  %v2152_v16 = vld [vmem:[#allocation2 + $0x8] sm:$0xff]  ;;  %v2693_v2 = vld [vmem:[%s4376_s15] ss:$0 sm:$0xff] }
 0x653   : > { %v1834_v34 = vadd.f32 %v1833_v27, %v1832_v22  ;;  %v1841_v54 = vadd.f32 %v1840_v30, %v1839_v25  ;;  %v1857_v62 = vsel %vm1364_vm15, %v1818_v42, %v1856_v59 }
 0x654   : > { %v1858_v45 = vsel %vm1366_vm0, %v1827_v43, %v1857_v62 }
 0x655   : > { %v1842_v39 = vrot.slane %v1841_v54, 2  ;;  %v1835_v17 = vrot.slane %v1834_v34, 1 }
 0x657   : > { %v1843_v19 = vadd.f32 %v1842_v39, %v1841_v54  ;;  %v1836_v5 = vadd.f32 %v1835_v17, %v1834_v34  ;;  %v2156_v34 = vld [vmem:[#allocation20 + $0x18] sm:$0xff]  ;;  %v2155_v54 = vld [vmem:[#allocation20 + $0x10] sm:$0xff] }
 0x658   : > { %2792 = vmatpush3.msra.mxu0 %v2156_v34 }
 0x659   : > { %v1844_v41 = vrot.slane %v1843_v19, 1  ;;  %v1859_v9 = vsel %vm1368_vm1, %v1836_v5, %v1858_v45  ;;  %2793 = vmatprep.subr.mxu0 %v3434_v51 }
 0x65a   : > { %2794 = vmatpush3.msra.mxu0 %v2155_v54 }
 0x65b   : > { %v1845_v58 = vadd.f32 %v1844_v41, %v1843_v19  ;;  %2795 = vmatprep.subr.mxu0 %v3434_v51 }
 0x65c   : > { %2796 = vmatpush3.msra.mxu0 %v2154_v11 }
 0x65d   : > { %v1860_v14 = vsel %vm1370_vm2, %v1845_v58, %v1859_v9  ;;  %v3018_v8 = vpop.eup %3017  ;;  %2797 = vmatprep.subr.mxu0 %v3434_v51 }
 0x65e   : > { %1861 = vrot.lane.b32.xlu1 %v1860_v14, %s4387_s16  ;;  %v1028_v47 = vadd.f32 1.0, %v3018_v8  ;;  %2798 = vmatpush3.msra.mxu0 %v2153_v37 }
 0x65f   : > { %2800 = vmatmul.mubr.msk.f32.vlgmr.msra.gmra.mxu0 %vm951_vm10, %v2152_v16 }
 0x660   : > { %3019 = vrcp.f32 %v1028_v47 }
 0x66d   : > { %v3020_v13 = vpop.eup %3019 }
 0x6d0   : > { %v1862_v46 = vpop.permute.xlu1 %1861 }
 0x6d1   : > { %v1864_v50 = vmul.f32 %v3020_v13, %v1862_v46 }
 0x6d3   : > { %1875 = vrot.lane.b32.xlu0 %v1864_v50, %s4386_s20 }
 0x6d7   : > { %2118 = vrot.lane.b32.xlu0 %v2116_v53, %s4387_s16 }
 0x70d   : > { %v2018_v49 = vpop.f32.mrf.mxu0 }
 0x70f   : > { %v2779_v0 = vpop.f32.mrf.mxu0 }
 0x71f   : > { %v2226_v42 = vpop.f32.mrf.mxu0 }
 0x721   : > { %v2801_v43 = vpop.f32.mrf.mxu0 }
 0x745   : > { %v1876_v56 = vpop.permute.xlu0 %1875 }
 0x746   : > { %2767 = vmatmul.mubr.msk.f32.vlgmr.msra.gmra.mxu1 %vm951_vm10, %v1876_v56 }
 0x747   : > { %2781 = vmatpush3.msra.mxu1 %v2026_v1  ;;  %2788 = vmatprep.mubr.msk.f32.mxu1 %vm3435_vm9, %v3434_v51 }
 0x748   : > { %2782 = vmatprep.subr.mxu1 %v3434_v51 }
 0x749   : > { %2783 = vmatpush3.msra.mxu1 %v2025_v48  ;;  %v2119_v30 = vpop.permute.xlu0 %2118 }
 0x74a   : > { %2784 = vmatprep.subr.mxu1 %v3434_v51 }
 0x74b   : > { %2785 = vmatpush3.msra.mxu1 %v2024_v24 }
 0x74c   : > { %2786 = vmatprep.subr.mxu1 %v3434_v51 }
 0x74d   : > { %2787 = vmatpush3.msra.mxu1 %v2023_v23 }
 0x74e   : > { %2789 = vmatmul.mubr.msk.f32.vlgmr.msra.gmra.mxu1 %vm951_vm10, %v2022_v6  ;;  %2802 = vmatprep.subr.mxu1 %v3434_v51 }
 0x74f   : > { %2810 = vmatprep.mubr.msk.f32.mxu1 %vm3435_vm9, %v3434_v51  ;;  %2803 = vmatpush3.msra.mxu1 %v2151_v15 }
 0x750   : > { %2804 = vmatprep.subr.mxu1 %v3434_v51 }
 0x751   : > { %2805 = vmatpush3.msra.mxu1 %v2150_v29 }
 0x752   : > { %2806 = vmatprep.subr.mxu1 %v3434_v51 }
 0x753   : > { %2807 = vmatpush3.msra.mxu1 %v2149_v20 }
 0x754   : > { %2808 = vmatprep.subr.mxu1 %v3434_v51 }
 0x755   : > { %2809 = vmatpush3.msra.mxu1 %v2148_v38 }
 0x806   : > { %v1945_v61 = vpop.f32.mrf.mxu1 }
 0x807   : > { %v2019_v52 = vadd.f32 %v2018_v49, %v1945_v61 }
 0x808   : > { %v2768_v31 = vpop.f32.mrf.mxu1 }
 0x80e   : > { %v2096_v4 = vpop.f32.mrf.mxu1 }
 0x80f   : > { %v2100_v55 = vadd.f32 %v2096_v4, %v2019_v52 }
 0x810   : > { %v2790_v21 = vpop.f32.mrf.mxu1 }
 0x811   : > { %v2108_v63 = vadd.f32 %v2689_v18, %v2100_v55 }
 0x813   : > { %3021 = vtanh.f32 %v2108_v63  ;;  %v2690_v25 = vmul.f32 -1.442695, %v2108_v63 }
 0x815   : > { %3023 = vpow2.f32 %v2690_v25 }
 0x820   : > { %v3022_v22 = vpop.eup %3021 }
 0x821   : > { %2123 = vrot.lane.b32.xlu1 %v3022_v22, %s3440_s13 }
 0x822   : > { %v3024_v28 = vpop.eup %3023 }
 0x823   : > { %v2112_v26 = vadd.f32 1.0, %v3024_v28 }
 0x825   : > { %3025 = vrcp.f32 %v2112_v26 }
 0x832   : > { %v3026_v7 = vpop.eup %3025 }
 0x833   : > { %v2121_v10 = vmul.f32 %v3026_v7, %v2119_v30 }
 0x893   : > { %v2124_v3 = vpop.permute.xlu1 %2123 }
 0x894   : > { %v2126_v27 = vmul.f32 %v3026_v7, %v2124_v3 }
 0x896   : > { %2128 = vrot.lane.b32.xlu1 %v2126_v27, %s4387_s16 }
 0x908   : > { %v2129_v33 = vpop.permute.xlu1 %2128 }
 0x909   : > { %v2131_v57 = vadd.f32 %v2129_v33, %v2121_v10 }
 0x90b   : > { %3027 = vtanh.f32 %v2131_v57 }
 0x918   : > { %v3028_v39 = vpop.eup %3027 }
 0x919   : > { %2134 = vrot.lane.b32.xlu0 %v3028_v39, %s3440_s13 }
 0x98b   : > { %v2135_v17 = vpop.permute.xlu0 %2134 }
 0x98c   : > { %v2137_v40 = vmul.f32 %v3026_v7, %v2135_v17 }
 0x98e   : > { %2139 = vrot.lane.b32.xlu1 %v2137_v40, %s4387_s16 }
 0x992   : > { %2320 = vrot.lane.b32.xlu1 %v2318_v12, %s4387_s16 }
 0xa00   : > { %v2140_v19 = vpop.permute.xlu1 %2139 }
 0xa01   : > { %2142 = vst.msk [vmem:[#allocation2] sm:$0xff] %vm951_vm10, %v2140_v19  ;;  %2811 = vmatmul.mubr.msk.f32.vlgmr.msra.gmra.mxu1 %vm951_vm10, %v2140_v19 }
 0xa04   : > { %v2321_v14 = vpop.permute.xlu1 %2320 }
 0xac1   : > { %v2298_v51 = vpop.f32.mrf.mxu1 }
 0xac2   : > { %v2299_v35 = vadd.f32 %v2298_v51, %v2226_v42 }
 0xac3   : > { %v2812_v32 = vpop.f32.mrf.mxu1 }
 0xac4   : > { %v2309_v5 = vadd.f32 %v2693_v2, %v2299_v35 }
 0xac6   : > { %3029 = vtanh.f32 %v2309_v5  ;;  %v2694_v41 = vmul.f32 -1.442695, %v2309_v5 }
 0xac8   : > { %3031 = vpow2.f32 %v2694_v41 }
 0xad3   : > { %v3030_v36 = vpop.eup %3029 }
 0xad4   : > { %2325 = vrot.lane.b32.xlu0 %v3030_v36, %s3440_s13 }
 0xad5   : > { %v3032_v59 = vpop.eup %3031 }
 0xad6   : > { %v2313_v62 = vadd.f32 1.0, %v3032_v59 }
 0xad8   : > { %3033 = vrcp.f32 %v2313_v62 }
 0xae5   : > { %v3034_v58 = vpop.eup %3033 }
 0xae6   : > { %v2323_v44 = vmul.f32 %v3034_v58, %v2321_v14 }
 0xb46   : > { %v2326_v45 = vpop.permute.xlu0 %2325 }
 0xb47   : > { %v2328_v9 = vmul.f32 %v3034_v58, %v2326_v45 }
 0xb49   : > { %2330 = vrot.lane.b32.xlu0 %v2328_v9, %s4387_s16 }
 0xbbb   : > { %v2331_v8 = vpop.permute.xlu0 %2330 }
 0xbbc   : > { %v2333_v47 = vadd.f32 %v2331_v8, %v2323_v44 }
 0xbbe   : > { %3035 = vtanh.f32 %v2333_v47 }
 0xbcb   : > { %v3036_v60 = vpop.eup %3035 }
 0xbcc   : > { %2336 = vrot.lane.b32.xlu1 %v3036_v60, %s3440_s13  ;;  %s3305_s13 = scalar_lea.vmem %s3304_s14, 256 }
 0xbcd   : > { %p3307_p0 = scmp.lt.s32.totalorder %s3305_s13, %s3299_s25 }
 0xbcf   : > { %p3308_p6 = por %p3307_p0, %p3306_p4 }
 0xbd0   : > { %2144 = vrot.lane.b32.xlu1 %v2131_v57, %s4386_s20 }
 0xbd1   : > { %p3309_p7 = pnand %p3308_p6, %p3302_p10 }
 0xbd3   : > { %3312 = shalt.err (!%p3309_p7)
}
 0xbd4   : > { %s3313_s5 = scalar_lea.hbm %s2462_s19, 128  ;;  %s3317_s1 = scalar_lea.hbm %s4430_s0, 896 }
 0xbd5   : > { %p3314_p12 = scmp.ne.s32.totalorder %s2462_s19, %s3313_s5  ;;  %p3318_p8 = scmp.lt.s32.totalorder %s2462_s19, %s4430_s0 }
 0xbd6   : > { %p3319_p9 = scmp.lt.s32.totalorder %s3317_s1, %s3313_s5 }
 0xbd7   : > { %p3315_p2 = pnand %p3314_p12, %p4431_p1 }
 0xbd8   : > { %p3320_p11 = por %p3319_p9, %p3318_p8 }
 0xbd9   : > { %p3316_p13 = pneg %p3315_p2 }
 0xbdb   : > { %p3321_p3 = pnand %p3320_p11, %p3316_p13 }
 0xbdd   : > { %3324 = shalt.err (!%p3321_p3)
}
 0xbde   : > { %2852 = dma.vmem_to_hbm [thread:$0]  (%p4431_p1), %s2465_s3, 128, %s2462_s19, %s2438_s11  }
 0xbdf   : > { %s4432_s14 = smov 32   ;;  %s4433_s16 = smov 96  }
 0xbe0   : > { %s4434_s20 = scalar_lea.vmem [#allocation21], %s3757_s10  ;;  %s4435_s25 = sshll.u32 %s3557_s30, 7 }
 0xbe1   : > { %s2451_s1 = sshll.u32 %s4434_s20, 4  ;;  %s4436_s5 = sld [smem:[#allocation42_spill]]  ;;  %s4316_s1 = int_to_ptr.vmem [resolvable:$true] %s2451_s1 }
 0xbe2   : > { %s4437_s19 = smov %s4434_s20  ;;  %s2433_s3 = scalar_lea.sflag [#allocation7], %s3754_s9 }
 0xbe3   : > { %s3325_s11 = scalar_lea.vmem %s4316_s1, 128  ;;  %s3442_s30 = smov [#allocation21]  }
 0xbe4   : > { %p3326_p5 = scmp.ne.s32.totalorder %s4316_s1, %s3325_s11  ;;  %s3329_s24 = sshll.u32 %s3442_s30, 4  ;;  %s3330_s24 = int_to_ptr.vmem [resolvable:$false] %s3329_s24 }
 0xbe5   : > { %p3332_p0 = scmp.lt.s32.totalorder %s4316_s1, %s3330_s24 }
 0xbe6   : > { %p3327_p10 = pnand %p3326_p5, %p4431_p1 }
 0xbe7   : > { %s4314_s18 = scalar_lea.hbm %s4436_s5, %s4435_s25 }
 0xbe8   : > { %p3328_p4 = pneg %p3327_p10 }
 0xc3e   : > { %v2337_v13 = vpop.permute.xlu1 %2336 }
 0xc3f   : > { %v2339_v46 = vmul.f32 %v3034_v58, %v2337_v13 }
 0xc41   : > { %2341 = vrot.lane.b32.xlu0 %v2339_v46, %s4432_s14  ;;  %s3331_s14 = scalar_lea.vmem %s3330_s24, 256 }
 0xc42   : > { %v2145_v50 = vpop.permute.xlu1 %2144  ;;  %p3333_p6 = scmp.lt.s32.totalorder %s3331_s14, %s3325_s11 }
 0xc43   : > { %2147 = vst.msk [vmem:[#allocation3] sm:$0xff] %vm951_vm10, %v2145_v50 }
 0xc44   : > { %p3334_p7 = por %p3333_p6, %p3332_p0 }
 0xc45   : > { %2346 = vrot.lane.b32.xlu0 %v2333_v47, %s4433_s16 }
 0xc46   : > { %p3335_p12 = pnand %p3334_p7, %p3328_p4 }
 0xcb3   : > { %v2342_v53 = vpop.permute.xlu0 %2341 }
 0xcb4   : > { %2344 = vst.msk [vmem:[#allocation2 + $0x8] sm:$0xff] %vm951_vm10, %v2342_v53  ;;  %2350 = vst.msk [vmem:[%s4437_s19] sm:$0xff] %vm951_vm10, %v2342_v53 }
 0xcb5   : > { %3338 = shalt.err (!%p3335_p12)
}
 0xcb6   : > { %s3339_s10 = scalar_lea.hbm %s4314_s18, 128  ;;  %s3343_s20 = scalar_lea.hbm %s4436_s5, 896 }
 0xcb7   : > { %p3340_p2 = scmp.ne.s32.totalorder %s4314_s18, %s3339_s10  ;;  %p3344_p9 = scmp.lt.s32.totalorder %s4314_s18, %s4436_s5 }
 0xcb8   : > { %p3345_p11 = scmp.lt.s32.totalorder %s3343_s20, %s3339_s10 }
 0xcb9   : > { %p3341_p13 = pnand %p3340_p2, %p4431_p1 }
 0xcba   : > { %p3346_p3 = por %p3345_p11, %p3344_p9 }
 0xcbb   : > { %p3342_p8 = pneg %p3341_p13 }
 0xcbd   : > { %p3347_p5 = pnand %p3346_p3, %p3342_p8 }
 0xcbf   : > { %3350 = shalt.err (!%p3347_p5)
}
 0xcc0   : > { %2851 = dma.vmem_to_hbm [thread:$0]  (%p4431_p1), %s4316_s1, 128, %s4314_s18, %s2433_s3   ;;  %v2347_v1 = vpop.permute.xlu0 %2346 }
 0xcc1   : > { %2349 = vst.msk [vmem:[#allocation3 + $0x8] sm:$0xff] %vm951_vm10, %v2347_v1 }
 0xcc2 PF: > { %p2913_p10 = scmp.ge.s32.totalorder %s3417_s29, 2  ;;  %s2476_s13 = sand.u32 1, %s3405_s26  }
 0xcc3   : > { %p4438_p4 = scmp.ne.s32.totalorder %s4413_s17, 0  ;;  %s2477_s19 = scalar_lea.sflag [#allocation7], %s2476_s13 }
 0xcc5   : > { %p2888_p0 = pnand %p2913_p10, %p4438_p4 }
 0xcc7   : > { %p2889_p6 = pneg %p2888_p0 }
 0xcc9   : > { %3396 = dma.done.wait (%p2889_p6), %s2477_s19, 128  }
 0xcca   : > { %3398 = vsyncadd (%p2889_p6), %s2477_s19, 4294967168  ;;  %s2486_s11 = scalar_lea.sflag [#allocation23], %s2476_s13 }
 0xccb   : > { %3400 = dma.done.wait (%p2889_p6), %s2486_s11, 128  }
 0xccc   : > { %3402 = vsyncadd (%p2889_p6), %s2486_s11, 4294967168  ;;  %p38_p1 = scmp.ge.s32.totalorder %s3687_s23, 9   ;;  %s4439_s26 = smov %s3409_s27 }
 0xccd   : > { %s4440_s27 = smov %s3413_s28  ;;  %s4441_s28 = smov %s3699_s21 }
 0xcce   : > { %s4442_s29 = smov %s3687_s23  ;;  %40 = sbr.rel (!%p38_p1) target bundleno = 22 (0x16), region = 189 }
 0xcd3   :  { %2491 = vsyncpa [#allocation6], 1 }
 0xcd4   :  { %2493 = vsyncpa [#allocation6 + $0x1], 1 }
 0xcd5   :  { %2494 = vsyncpa [#allocation9], 1 }
 0xcd6   :  { %2495 = vsyncpa [#allocation13], 1 }
 0xcd7   :  { %2496 = vsyncpa [#allocation16], 1 }
 0xcd8   :  { %2497 = vsyncpa [#allocation19], 1 }
 0xcd9   :  { %2498 = vsyncpa [#allocation7], 1 }
 0xcda   :  { %2500 = vsyncpa [#allocation7 + $0x1], 1 }
 0xcdb   :  { %2501 = vsyncpa [#allocation23], 1 }
 0xcdc   :  { %2503 = vsyncpa [#allocation23 + $0x1], 1 }

</bundles_post_ra>
